<compile_context>
chip_gen: v6e
topology: v6e:2x2x1
jax: 0.10.0
libtpu: 0.0.40
codegen_flags: <defaults>
</compile_context>

<pallas_src>
import math
import functools
import numpy as np

import jax
import jax.numpy as jnp
from jax import lax
from jax.experimental import pallas as pl
from jax.experimental.pallas import tpu as pltpu

F32_MIN = float(jnp.finfo(jnp.float32).min)


# ----------------------------- tiled linear (matmul) -------------------------
def _matmul_kernel(x_ref, w_ref, o_ref, acc_ref):
    @pl.when(pl.program_id(2) == 0)
    def _init():
        acc_ref[...] = jnp.zeros_like(acc_ref)

    acc_ref[...] += jnp.dot(x_ref[...], w_ref[...],
                            preferred_element_type=jnp.float32)

    @pl.when(pl.program_id(2) == pl.num_programs(2) - 1)
    def _store():
        o_ref[...] = acc_ref[...].astype(o_ref.dtype)


def _pick_tile(dim, pref, align):
    """Largest tile <= pref dividing dim (falls back to the full dim).

    TODO(synk): odd dims fall back to the full dimension (no remainder path).
    """
    if dim <= pref:
        return dim
    t = pref
    while t > align and (dim % t) != 0:
        t //= 2
    return t if (dim % t) == 0 else dim


def linear(x, w, *, tm_pref=512, tn_pref=512, tk_pref=1024):
    M, K = x.shape
    K2, N = w.shape
    assert K == K2
    tm = _pick_tile(M, tm_pref, 8)
    tn = _pick_tile(N, tn_pref, 128)
    tk = _pick_tile(K, tk_pref, 128)
    grid = (M // tm, N // tn, K // tk)
    return pl.pallas_call(
        _matmul_kernel,
        out_shape=jax.ShapeDtypeStruct((M, N), x.dtype),
        grid=grid,
        in_specs=[
            pl.BlockSpec((tm, tk), lambda i, j, k: (i, k)),
            pl.BlockSpec((tk, tn), lambda i, j, k: (k, j)),
        ],
        out_specs=pl.BlockSpec((tm, tn), lambda i, j, k: (i, j)),
        scratch_shapes=[pltpu.VMEM((tm, tn), jnp.float32)],
        compiler_params=pltpu.CompilerParams(
            dimension_semantics=("parallel", "parallel", "arbitrary"),
            vmem_limit_bytes=48 * 1024 * 1024),
    )(x, w)


# --------------------------- H2O attention kernel ---------------------------
def _h2o_attn_kernel(q_ref, k_ref, v_ref, cos_ref, sin_ref, o_ref, *,
                     seq_len, head_dim, q_tile, heavy_budget, recent_budget):
    T, D, tq = seq_len, head_dim, q_tile
    half = D // 2
    scale = 1.0 / math.sqrt(D)
    n_tiles = T // tq

    cos = cos_ref[...]          # (T, D)
    sins = sin_ref[...]         # (T, D)  -- sin pre-multiplied by rotate_half sign

    # K and V for this head (single head per grid step).
    k = k_ref[0].astype(jnp.float32)                        # (T, D)
    v = v_ref[0]                                            # (T, D)
    k = k * cos + pltpu.roll(k, shift=half, axis=1) * sins  # RoPE on K once

    def rope_q(start):
        q = q_ref[0, pl.ds(start, tq), :].astype(jnp.float32)   # (tq, D)
        c = cos_ref[pl.ds(start, tq), :]
        s = sin_ref[pl.ds(start, tq), :]
        return q * c + pltpu.roll(q, shift=half, axis=1) * s

    def masked_exp(start):
        """Per-q-tile exp(s - rowmax) with the causal mask folded in."""
        q_t = rope_q(start)
        # Last-dim contraction: no (D, T) transpose of k is materialized.
        s = lax.dot_general(q_t, k, (((1,), (1,)), ((), ())),
                            preferred_element_type=jnp.float32) * scale
        row = lax.broadcasted_iota(jnp.int32, (tq, T), 0) + start
        col = lax.broadcasted_iota(jnp.int32, (tq, T), 1)
        s = jnp.where(row >= col, s, F32_MIN)
        m = jnp.max(s, axis=-1, keepdims=True)               # (tq, 1)
        e = jnp.exp(s - m)                                    # masked entries -> 0
        return e, row, col

    # ---- phase 1: accumulate per-key column sums of the first softmax -------
    def phase1(qi, acc):
        start = pl.multiple_of(qi * tq, tq)
        e, _, _ = masked_exp(start)
        rinv = 1.0 / jnp.sum(e, axis=-1, keepdims=True)          # (tq, 1) exact
        rinv8 = jnp.transpose(jnp.broadcast_to(rinv, (tq, 8)))   # (8, tq)
        # col sums of the normalized probabilities without materializing p1.
        return acc + jnp.dot(rinv8, e, preferred_element_type=jnp.float32)

    colsum8 = lax.fori_loop(0, n_tiles, phase1, jnp.zeros((8, T), jnp.float32))

    # ---- heavy-hitter top-k via rank (bf16 MXU count) ------------------------
    cs_row = colsum8[0:1, :]                                  # (1, T)
    cs_col = jnp.transpose(colsum8)[:, 0:1]                   # (T, 1)
    ki = lax.broadcasted_iota(jnp.int32, (T, T), 0)
    kj = lax.broadcasted_iota(jnp.int32, (T, T), 1)
    # rank[j] = #{i : cs[i] > cs[j] or (cs[i] == cs[j] and i < j)}
    beats = (cs_col > cs_row) | ((cs_col == cs_row) & (ki < kj))
    ones8 = jnp.ones((8, T), jnp.bfloat16)
    rank = jnp.dot(ones8, beats.astype(jnp.bfloat16),
                   preferred_element_type=jnp.float32)[0:1, :]   # (1, T)
    heavy = rank < float(heavy_budget)                           # (1, T)

    # ---- phase 2: second softmax reuses e1; normalize after PV matmul --------
    @pl.loop(0, n_tiles)
    def _phase2(qi):
        start = pl.multiple_of(qi * tq, tq)
        e, row, col = masked_exp(start)
        band = jnp.abs(row - col) <= recent_budget
        keep = jnp.logical_or(heavy, band)                       # (tq, T)
        kept = jnp.where(keep, e, 0.0)
        denom = jnp.sum(kept, axis=-1, keepdims=True)            # diag kept => > 0
        out = jnp.dot(kept.astype(v.dtype), v,
                      preferred_element_type=jnp.float32) * (1.0 / denom)
        o_ref[0, pl.ds(start, tq), :] = out.astype(o_ref.dtype)


# --------------------------------- wrapper ----------------------------------
def h2o_llama_attention(hidden_states, wqkv, wo, cos, sin_signed,
                        num_heads, heavy_ratio, recent_ratio, *, q_block=256):
    B, T, H = hidden_states.shape
    NH = num_heads
    D = H // NH

    # Fused q/k/v projection (weight pre-concatenated at parameter setup time).
    qkv = linear(hidden_states.reshape(B * T, H), wqkv).reshape(B, T, 3 * H)

    heavy_budget = int(heavy_ratio * T)
    recent_budget = int(recent_ratio * T)

    tq = min(q_block, T)
    while T % tq:
        tq //= 2
    assert tq >= 8 and T % tq == 0

    kernel = functools.partial(
        _h2o_attn_kernel, seq_len=T, head_dim=D, q_tile=tq,
        heavy_budget=heavy_budget, recent_budget=recent_budget)

    attn = pl.pallas_call(
        kernel,
        out_shape=jax.ShapeDtypeStruct((B, T, H), hidden_states.dtype),
        grid=(B, NH),
        in_specs=[
            pl.BlockSpec((1, T, D), lambda b, h: (b, 0, h)),            # q head
            pl.BlockSpec((1, T, D), lambda b, h: (b, 0, NH + h)),       # k head
            pl.BlockSpec((1, T, D), lambda b, h: (b, 0, 2 * NH + h)),   # v head
            pl.BlockSpec((T, D), lambda b, h: (0, 0)),                  # cos table
            pl.BlockSpec((T, D), lambda b, h: (0, 0)),                  # signed sin
        ],
        out_specs=pl.BlockSpec((1, T, D), lambda b, h: (b, 0, h)),
        compiler_params=pltpu.CompilerParams(
            dimension_semantics=("parallel", "parallel"),
            vmem_limit_bytes=48 * 1024 * 1024),
    )(qkv, qkv, qkv, cos, sin_signed)

    out = linear(attn.reshape(B * T, H), wo).reshape(B, T, H)
    return out


# --------------------------- pure-JAX reference ------------------------------
def _ref_attention(hidden_states, params, attention_mask, cos, sin,
                   num_heads, heavy_ratio, recent_ratio):
    B, T, H = hidden_states.shape
    D = H // num_heads
    hp = jax.lax.Precision.HIGHEST

    def proj(w):
        return (hidden_states @ w).reshape(B, T, num_heads, D).transpose(0, 2, 1, 3)

    q, k, v = proj(params["wq"]), proj(params["wk"]), proj(params["wv"])

    def rot_half(x):
        return jnp.concatenate([-x[..., D // 2:], x[..., :D // 2]], axis=-1)

    q = q * cos + rot_half(q) * sin
    k = k * cos + rot_half(k) * sin

    s = jnp.einsum("bhqd,bhkd->bhqk", q, k, precision=hp) / math.sqrt(D)
    s = jnp.maximum(s + attention_mask, F32_MIN)
    p1 = jax.nn.softmax(s, axis=-1)
    col_sum = p1.sum(axis=-2)                                 # (B, Nh, T)

    heavy_budget = int(heavy_ratio * T)
    recent_budget = int(recent_ratio * T)
    _, idx = jax.lax.top_k(col_sum, heavy_budget)
    heavy = jnp.sum(jax.nn.one_hot(idx, T, dtype=jnp.float32), axis=-2) > 0

    i_idx = jnp.arange(T)[:, None]
    j_idx = jnp.arange(T)[None, :]
    band = jnp.abs(i_idx - j_idx) <= recent_budget
    keep = heavy[:, :, None, :] | band[None, None]

    s2 = jnp.where(keep, s, F32_MIN)
    p2 = jax.nn.softmax(s2, axis=-1)
    o = jnp.einsum("bhqk,bhkd->bhqd", p2, v, precision=hp)
    o = o.transpose(0, 2, 1, 3).reshape(B, T, H)
    return o @ params["wo"]


# ----------------------------------- main ------------------------------------
if __name__ == "__main__":
    B, T, H, NH = 2, 128, 512, 4
    D = H // NH
    heavy_ratio = recent_ratio = 0.25

    key = jax.random.PRNGKey(0)
    k1, k2, k3, k4, k5 = jax.random.split(key, 5)
    wscale = 1.0 / math.sqrt(H)
    params = {
        "wq": jax.random.normal(k1, (H, H), jnp.float32) * wscale,
        "wk": jax.random.normal(k2, (H, H), jnp.float32) * wscale,
        "wv": jax.random.normal(k3, (H, H), jnp.float32) * wscale,
        "wo": jax.random.normal(k4, (H, H), jnp.float32) * wscale,
    }
    hidden = jax.random.normal(k5, (B, T, H), jnp.float32)

    # Fused qkv weight built ONCE at parameter-setup time.
    wqkv = jnp.concatenate([params["wq"], params["wk"], params["wv"]], axis=1)

    # HF-style additive causal mask, only needed by the pure-JAX reference.
    causal = jnp.where(jnp.arange(T)[None, :] <= jnp.arange(T)[:, None], 0.0, F32_MIN)
    attn_mask = jnp.broadcast_to(causal, (B, 1, T, T)).astype(jnp.float32)

    # RoPE tables (LlamaRotaryEmbedding with position_ids = arange(T)).
    inv_freq = 1.0 / (10000.0 ** (np.arange(0, D, 2, dtype=np.float32) / D))
    t = np.arange(T, dtype=np.float32)
    freqs = np.outer(t, inv_freq)
    emb = np.concatenate([freqs, freqs], axis=-1)
    cos = jnp.asarray(np.cos(emb), jnp.float32)
    sin = jnp.asarray(np.sin(emb), jnp.float32)
    # rotate_half(x) == roll(x, D/2) * sign with sign = [-1]*D/2 + [1]*D/2;
    # fold the sign into the sin table so the kernel does one fewer multiply.
    sign = np.concatenate([-np.ones(D // 2), np.ones(D // 2)]).astype(np.float32)
    sin_signed = jnp.asarray(np.sin(emb) * sign, jnp.float32)

    # q_block=64 so the small test exercises the multi-q-tile two-phase path.
    out = h2o_llama_attention(hidden, wqkv, params["wo"], cos, sin_signed,
                              NH, heavy_ratio, recent_ratio, q_block=64)
    out = jax.block_until_ready(out)

    ref = _ref_attention(hidden, params, attn_mask, cos, sin,
                         NH, heavy_ratio, recent_ratio)
    assert out.shape == (B, T, H)
    assert np.allclose(np.asarray(out), np.asarray(ref), atol=2e-3, rtol=2e-3), (
        float(np.max(np.abs(np.asarray(out) - np.asarray(ref)))))
    print("KERNEL_OK")
</pallas_src>

<mosaic_0001>
module attributes {stable_mosaic.version = 11 : i64} {
  func.func @_matmul_kernel(%arg0: i32, %arg1: i32, %arg2: i32, %arg3: memref<256x512xf32, #tpu.memory_space<vmem>>, %arg4: memref<512x512xf32, #tpu.memory_space<vmem>>, %arg5: memref<256x512xf32, #tpu.memory_space<vmem>>, %arg6: memref<256x512xf32, #tpu.memory_space<vmem>>) attributes {dimension_semantics = [#tpu.dimension_semantics<parallel>, #tpu.dimension_semantics<parallel>, #tpu.dimension_semantics<arbitrary>], iteration_bounds = array<i64: 1, 3, 1>, scalar_prefetch = 0 : i64, scratch_operands = 1 : i64, tpu.core_type = #tpu.core_type<tc>, window_params = [{transform_indices = @transform_0, window_bounds = array<i64: 256, 512>}, {transform_indices = @transform_1, window_bounds = array<i64: 512, 512>}, {transform_indices = @transform_2, window_bounds = array<i64: 256, 512>}]} {
    %c0_i32 = arith.constant 0 : i32
    %0 = arith.cmpi eq, %arg2, %c0_i32 : i32
    %1 = arith.extui %0 : i1 to i32
    %c0_i32_0 = arith.constant 0 : i32
    %2 = arith.cmpi ne, %1, %c0_i32_0 : i32
    scf.if %2 {
      %cst_10 = arith.constant 0.000000e+00 : f32
      %12 = vector.broadcast %cst_10 : f32 to vector<256x512xf32>
      %c0_11 = arith.constant 0 : index
      %c0_12 = arith.constant 0 : index
      %13 = vector.load %arg6[%c0_11, %c0_12] : memref<256x512xf32, #tpu.memory_space<vmem>>, vector<256x512xf32>
      tpu.vector_store %arg6[%c0_11, %c0_12], %12 {strides = array<i32>} : memref<256x512xf32, #tpu.memory_space<vmem>>, vector<256x512xf32>,
    } else {
    }
    %c0 = arith.constant 0 : index
    %c0_1 = arith.constant 0 : index
    %3 = vector.load %arg6[%c0, %c0_1] : memref<256x512xf32, #tpu.memory_space<vmem>>, vector<256x512xf32>
    %c0_2 = arith.constant 0 : index
    %c0_3 = arith.constant 0 : index
    %4 = vector.load %arg3[%c0_2, %c0_3] : memref<256x512xf32, #tpu.memory_space<vmem>>, vector<256x512xf32>
    %c0_4 = arith.constant 0 : index
    %c0_5 = arith.constant 0 : index
    %5 = vector.load %arg4[%c0_4, %c0_5] : memref<512x512xf32, #tpu.memory_space<vmem>>, vector<512x512xf32>
    %cst = arith.constant dense<0.000000e+00> : vector<256x512xf32>
    %6 = tpu.matmul %4, %5, %cst {dimension_numbers = #tpu.dot_dimension_numbers<[1], [0], [0], [1], [0, 0, 1, 1], [], []>} : vector<256x512xf32>, vector<512x512xf32>, vector<256x512xf32> -> vector<256x512xf32>
    %7 = arith.addf %3, %6 : vector<256x512xf32>
    %c0_6 = arith.constant 0 : index
    %c0_7 = arith.constant 0 : index
    %8 = vector.load %arg6[%c0_6, %c0_7] : memref<256x512xf32, #tpu.memory_space<vmem>>, vector<256x512xf32>
    tpu.vector_store %arg6[%c0_6, %c0_7], %7 {strides = array<i32>} : memref<256x512xf32, #tpu.memory_space<vmem>>, vector<256x512xf32>,
    %c0_i32_8 = arith.constant 0 : i32
    %9 = arith.cmpi eq, %arg2, %c0_i32_8 : i32
    %10 = arith.extui %9 : i1 to i32
    %c0_i32_9 = arith.constant 0 : i32
    %11 = arith.cmpi ne, %10, %c0_i32_9 : i32
    scf.if %11 {
      %c0_10 = arith.constant 0 : index
      %c0_11 = arith.constant 0 : index
      %12 = vector.load %arg6[%c0_10, %c0_11] : memref<256x512xf32, #tpu.memory_space<vmem>>, vector<256x512xf32>
      %c0_12 = arith.constant 0 : index
      %c0_13 = arith.constant 0 : index
      %13 = vector.load %arg5[%c0_12, %c0_13] : memref<256x512xf32, #tpu.memory_space<vmem>>, vector<256x512xf32>
      tpu.vector_store %arg5[%c0_12, %c0_13], %12 {strides = array<i32>} : memref<256x512xf32, #tpu.memory_space<vmem>>, vector<256x512xf32>,
    } else {
    }
    return
  }
  func.func @transform_0(%arg0: i32, %arg1: i32, %arg2: i32) -> (i32, i32) {
    %c0_i32 = arith.constant 0 : i32
    return %arg0, %arg2 : i32, i32
  }
  func.func @transform_1(%arg0: i32, %arg1: i32, %arg2: i32) -> (i32, i32) {
    %c0_i32 = arith.constant 0 : i32
    return %arg2, %arg1 : i32, i32
  }
  func.func @transform_2(%arg0: i32, %arg1: i32, %arg2: i32) -> (i32, i32) {
    %c0_i32 = arith.constant 0 : i32
    return %arg0, %arg1 : i32, i32
  }
}

</mosaic_0001>

<bundles_post_ra>
// kernel: tpu_custom_call.1
= control target key start
LH: loop header
LB: loop body
LE: loop exit
PB: predicated region body
PF: predicated region fallthrough
CT: control target
= control target key end

     0   :  { %7 = vsyncpa [#allocation4], 0  ;;  %s3863_s0 = inlined_call_operand.hbm [shape: f32[256,512], index: 0, kind: input, shape index: {}]   ;;  %s3864_s1 = inlined_call_operand.hbm [shape: f32[512,1536], index: 1, kind: input, shape index: {}]   ;;  %s3865_s2 = inlined_call_operand.hbm [shape: f32[256,1536], index: 2, kind: output, shape index: {}]  }
   0x1   :  { %8 = vsyncpa [#allocation7], 0 }
   0x2   :  { %10 = vsyncpa [#allocation7 + $0x1], 0 }
   0x3   :  { %11 = vsyncpa [#allocation5], 0 }
   0x4   :  { %13 = vsyncpa [#allocation5 + $0x1], 0  ;;  %s2799_s9 = smov 0   ;;  %s2801_s10 = smov 0  }
   0x5   :  { %s2803_s11 = smov 0   ;;  %s2805_s12 = smov 0  }
   0x6   :  { %s2807_s13 = smov 0   ;;  %s2809_s14 = smov 0  }
   0x7 LB: > { %s2533_s15 = sadd.s32 4294967295, %s2773_s14   ;;  %s2534_s16 = sadd.s32 4294967294, %s2773_s14   ;;  %s2773_s14 = sphi %s2809_s14, %s19_s14   ;;  %s2769_s13 = sphi %s2807_s13, %s4092_s13   ;;  %s2765_s12 = sphi %s2805_s12, %s4091_s12   ;;  %s2761_s11 = sphi %s2803_s11, %s4090_s11   ;;  %s2757_s10 = sphi %s2801_s10, %s4089_s10   ;;  %s2753_s9 = sphi %s2799_s9, %s4088_s9  }
   0x8   : > { %p82_p0 = scmp.ne.s32.totalorder %s2761_s11, %s2757_s10  ;;  %p83_p1 = scmp.eq.s32.totalorder %s2773_s14, 0 }
   0x9   : > { %p88_p2 = scmp.ne.s32.totalorder %s2757_s10, %s2753_s9  ;;  %p2836_p3 = scmp.eq.s32.totalorder %s2533_s15, 0 }
   0xa   : > { %p2840_p4 = por %p83_p1, %p82_p0  ;;  %p114_p5 = scmp.eq.s32.totalorder %s2533_s15, 2 }
   0xb   : > { %p2846_p6 = por %p2836_p3, %p88_p2  ;;  %p120_p7 = scmp.eq.s32.totalorder %s2534_s16, 2 }
   0xc   : > { %p2850_p8 = por %p114_p5, %p82_p0  ;;  %p2535_p9 = scmp.ge.s32.totalorder %s2773_s14, 1 }
   0xd   : > { %s3940_s19 = scalar_select %p2846_p6, 1, 0 }
   0xe   : > { %s3941_s20 = scalar_select %p2850_p8, 1, 0 }
   0xf   : > { %p2855_p10 = por %p120_p7, %p88_p2  ;;  %p127_p11 = scmp.lt.s32.totalorder %s2773_s14, 4 }
  0x10   : > { %s2775_s23 = smov [#allocation3]   ;;  %p2573_p0 = scmp.lt.s32.totalorder %s2773_s14, 3 }
  0x11   : > { %s3942_s21 = scalar_select %p2855_p10, 1, 0 }
  0x12   : > { %p2860_p12 = pnand %p2535_p9, %p127_p11  ;;  %s145_s24 = sshll.u32 %s2775_s23, 4  ;;  %s146_s24 = int_to_ptr.vmem [resolvable:$true] %s145_s24 }
  0x13   : > { %3943 = sst [smem:[#allocation12_spill]] %s3942_s21  ;;  %p2875_p2 = pnand %p2573_p0, %p2840_p4 }
  0x14   : > { %p2560_p13 = pneg %p2860_p12  ;;  %s34_s27 = sadd.s32 1, %s2769_s13 }
  0x15   : > { %s2646_s28 = scalar_lea.vmem %s146_s24, 16384  ;;  %p2654_p10 = scmp.lt.s32.totalorder %s146_s24, %s146_s24 }
  0x16   : > { %p2869_p1 = pnand %p2560_p13, %p2836_p3  ;;  %p2647_p7 = scmp.ne.s32.totalorder %s146_s24, %s2646_s28 }
  0x17   : > { %p2655_p8 = scmp.lt.s32.totalorder %s2646_s28, %s2646_s28 }
  0x18   : > { %p2637_p5 = pneg %p2869_p1 }
  0x19   : > { %p2656_p6 = por %p2655_p8, %p2654_p10 }
  0x1a   : > { %p2649_p9 = pnand %p2647_p7, %p2637_p5 }
  0x1c   : > { %p2650_p11 = pneg %p2649_p9 }
  0x1e   : > { %p2657_p13 = pnand %p2656_p6, %p2650_p11 }
  0x20   : > { %2660 = shalt.err (!%p2657_p13)
}
  0x21   : > { %s3869_s29 = smov 512   ;;  %s2777_s30 = smov 32  }
  0x22   : > { %2563 = dma.hbm_to_vmem [thread:$0]  (!%p2869_p1), %s3863_s0, 16384, %s146_s24, [#allocation4], %s3869_s29, %s3869_s29, %s2777_s30  }
  0x23   : > { %p36_p4 = scmp.ge.s32.totalorder %s34_s27, 3  ;;  %s75_s5 = sadd.s32 1, %s2761_s11 }
  0x24   : > { %s159_s6 = sand.u32 1, %s2761_s11   ;;  %s2550_s15 = sshll.u32 %s2769_s13, 9 }
  0x25   : > { %s4094_s27 = smov (%p36_p4, %s34_s27), 0  ;;  %s2538_s7 = sshll.u32 %s159_s6, 11 }
  0x26   : > { %s71_s8 = ssub.s32 %s2769_s13, %s4094_s27  ;;  %s172_s23 = scalar_lea.hbm %s3864_s1, %s2550_s15 }
  0x27   : > { %p73_p6 = scmp.eq.s32.totalorder %s71_s8, 0  ;;  %s163_s25 = scalar_lea.vmem [#allocation6], %s2538_s7 }
  0x28   : > { %s173_s28 = sshll.u32 %s163_s25, 4  ;;  %s160_s24 = scalar_lea.sflag [#allocation7], %s159_s6  ;;  %s174_s28 = int_to_ptr.vmem [resolvable:$true] %s173_s28 }
  0x29   : > { %s2901_s21 = scalar_select %p73_p6, %s2761_s11, %s75_s5  }
  0x2a   : > { %p2663_p8 = pneg %p2875_p2  ;;  %s2674_s3 = scalar_lea.vmem %s174_s28, 32768 }
  0x2b   : > { %p2675_p10 = scmp.ne.s32.totalorder %s174_s28, %s2674_s3  ;;  %s2778_s4 = smov [#allocation6]  }
  0x2c   : > { %s2679_s29 = sshll.u32 %s2778_s4, 4  ;;  %s2680_s29 = int_to_ptr.vmem [resolvable:$false] %s2679_s29 }
  0x2d   : > { %p2677_p0 = pnand %p2675_p10, %p2663_p8  ;;  %s2681_s8 = scalar_lea.vmem %s2680_s29, 65536 }
  0x2e   : > { %p2682_p5 = scmp.lt.s32.totalorder %s174_s28, %s2680_s29  ;;  %p2683_p7 = scmp.lt.s32.totalorder %s2681_s8, %s2674_s3 }
  0x2f   : > { %p2678_p1 = pneg %p2677_p0 }
  0x30   : > { %p2684_p9 = por %p2683_p7, %p2682_p5 }
  0x32   : > { %p2685_p11 = pnand %p2684_p9, %p2678_p1 }
  0x34   : > { %2688 = shalt.err (!%p2685_p11)
}
  0x35   : > { %s2779_s7 = smov 1536   ;;  %s3947_s5 = smov 512  }
  0x36   : > { %2567 = dma.hbm_to_vmem [thread:$0]  (!%p2875_p2), %s172_s23, 32768, %s174_s28, %s160_s24, %s2779_s7, %s3947_s5, %s2777_s30  }
  0x37   : > { %185 = sbr.rel (%p2860_p12) target bundleno = 596 (0x254), region = 28 }
  0x3c   : > { %2740 = dma.done.wait (%p2836_p3), [#allocation4], 16384  }
  0x3d   : > { %2742 = vsyncadd (%p2836_p3), [#allocation4], 4294950912  ;;  %s2916_s29 = sand.u32 1, %s2757_s10   ;;  %p3948_p2 = scmp.ne.s32.totalorder %s3940_s19, 0 }
  0x3e   : > { %s2543_s6 = sshll.u32 %s2916_s29, 11  ;;  %s192_s26 = scalar_lea.sflag [#allocation7], %s2916_s29 }
  0x3f   : > { %s2920_s15 = scalar_lea.vmem [#allocation6], %s2543_s6 }
  0x40   : > { %2744 = dma.done.wait (%p3948_p2), %s192_s26, 32768  }
  0x41   : > { %2746 = vsyncadd (%p3948_p2), %s192_s26, 4294934528  ;;  %v671_v0 = vld [vmem:[%s2920_s15 + $0x1e8] sm:$0xff]  ;;  %v670_v2 = vld [vmem:[%s2920_s15 + $0x1e0] sm:$0xff]  ;;  %s2544_s17 = sshll.u32 %s2916_s29, 10  ;;  %s2551_s22 = sshll.u32 %s2765_s12, 9 }
  0x42   : > { %v799_v1 = vld [vmem:[%s2920_s15 + $0x5e8] sm:$0xff]  ;;  %866 = vmatprep.subr.mxu0 %v671_v0  ;;  %v798_v3 = vld [vmem:[%s2920_s15 + $0x5e0] sm:$0xff]  ;;  %s3621_s19 = scalar_lea.vmem [#allocation8], %s2544_s17  ;;  %s3812_s23 = scalar_lea.hbm %s3865_s2, %s2551_s22 }
  0x43   : > { %1123 = vmatprep.subr.mxu1 %v799_v1  ;;  %v667_v4 = vld [vmem:[%s2920_s15 + $0x1c8] sm:$0xff]  ;;  %867 = vmatpush1.msra.mxu0 %v670_v2  ;;  %v666_v6 = vld [vmem:[%s2920_s15 + $0x1c0] sm:$0xff]  ;;  %s2426_s30 = sshll.u32 %s3621_s19, 4  ;;  %s2410_s12 = scalar_lea.sflag [#allocation5], %s2916_s29  ;;  %s3814_s30 = int_to_ptr.vmem [resolvable:$true] %s2426_s30 }
  0x44   : > { %v795_v5 = vld [vmem:[%s2920_s15 + $0x5c8] sm:$0xff]  ;;  %1124 = vmatpush1.msra.mxu1 %v798_v3  ;;  %v794_v7 = vld [vmem:[%s2920_s15 + $0x5c0] sm:$0xff]  ;;  %868 = vmatprep.subr.mxu0 %v667_v4  ;;  %s2689_s25 = scalar_lea.vmem %s3814_s30, 16384  ;;  %p4085_p12 = scmp.ne.s32.totalorder %s3941_s20, 0 }
  0x45   : > { %v663_v8 = vld [vmem:[%s2920_s15 + $0x1a8] sm:$0xff]  ;;  %1125 = vmatprep.subr.mxu1 %v795_v5  ;;  %v662_v10 = vld [vmem:[%s2920_s15 + $0x1a0] sm:$0xff]  ;;  %869 = vmatpush1.msra.mxu0 %v666_v6  ;;  %p2690_p3 = scmp.ne.s32.totalorder %s3814_s30, %s2689_s25  ;;  %s2780_s28 = smov [#allocation8]  }
  0x46   : > { %v791_v9 = vld [vmem:[%s2920_s15 + $0x5a8] sm:$0xff]  ;;  %v790_v11 = vld [vmem:[%s2920_s15 + $0x5a0] sm:$0xff]  ;;  %1126 = vmatpush1.msra.mxu1 %v794_v7  ;;  %870 = vmatprep.subr.mxu0 %v663_v8  ;;  %s2693_s24 = sshll.u32 %s2780_s28, 4  ;;  %s2694_s24 = int_to_ptr.vmem [resolvable:$false] %s2693_s24 }
  0x47   : > { %v659_v12 = vld [vmem:[%s2920_s15 + $0x188] sm:$0xff]  ;;  %1127 = vmatprep.subr.mxu1 %v791_v9  ;;  %v658_v14 = vld [vmem:[%s2920_s15 + $0x180] sm:$0xff]  ;;  %871 = vmatpush1.msra.mxu0 %v662_v10  ;;  %p2691_p13 = pnand %p2690_p3, %p4085_p12  ;;  %s2695_s3 = scalar_lea.vmem %s2694_s24, 32768 }
  0x48   : > { %v787_v13 = vld [vmem:[%s2920_s15 + $0x588] sm:$0xff]  ;;  %v786_v15 = vld [vmem:[%s2920_s15 + $0x580] sm:$0xff]  ;;  %1128 = vmatpush1.msra.mxu1 %v790_v11  ;;  %872 = vmatprep.subr.mxu0 %v659_v12  ;;  %p2696_p6 = scmp.lt.s32.totalorder %s3814_s30, %s2694_s24  ;;  %p2697_p8 = scmp.lt.s32.totalorder %s2695_s3, %s2689_s25 }
  0x49   : > { %v655_v16 = vld [vmem:[%s2920_s15 + $0x168] sm:$0xff]  ;;  %1129 = vmatprep.subr.mxu1 %v787_v13  ;;  %v654_v18 = vld [vmem:[%s2920_s15 + $0x160] sm:$0xff]  ;;  %873 = vmatpush1.msra.mxu0 %v658_v14  ;;  %p2692_p4 = pneg %p2691_p13 }
  0x4a   : > { %v783_v17 = vld [vmem:[%s2920_s15 + $0x568] sm:$0xff]  ;;  %v782_v19 = vld [vmem:[%s2920_s15 + $0x560] sm:$0xff]  ;;  %1130 = vmatpush1.msra.mxu1 %v786_v15  ;;  %874 = vmatprep.subr.mxu0 %v655_v16  ;;  %p2698_p10 = por %p2697_p8, %p2696_p6 }
  0x4b   : > { %v651_v20 = vld [vmem:[%s2920_s15 + $0x148] sm:$0xff]  ;;  %1131 = vmatprep.subr.mxu1 %v783_v17  ;;  %v650_v22 = vld [vmem:[%s2920_s15 + $0x140] sm:$0xff]  ;;  %875 = vmatpush1.msra.mxu0 %v654_v18 }
  0x4c   : > { %v779_v21 = vld [vmem:[%s2920_s15 + $0x548] sm:$0xff]  ;;  %v778_v23 = vld [vmem:[%s2920_s15 + $0x540] sm:$0xff]  ;;  %1132 = vmatpush1.msra.mxu1 %v782_v19  ;;  %876 = vmatprep.subr.mxu0 %v651_v20  ;;  %p2699_p0 = pnand %p2698_p10, %p2692_p4 }
  0x4d   : > { %v647_v24 = vld [vmem:[%s2920_s15 + $0x128] sm:$0xff]  ;;  %1133 = vmatprep.subr.mxu1 %v779_v21  ;;  %v646_v26 = vld [vmem:[%s2920_s15 + $0x120] sm:$0xff]  ;;  %877 = vmatpush1.msra.mxu0 %v650_v22 }
  0x4e   : > { %v775_v25 = vld [vmem:[%s2920_s15 + $0x528] sm:$0xff]  ;;  %v774_v27 = vld [vmem:[%s2920_s15 + $0x520] sm:$0xff]  ;;  %1134 = vmatpush1.msra.mxu1 %v778_v23  ;;  %878 = vmatprep.subr.mxu0 %v647_v24 }
  0x4f   : > { %v643_v28 = vld [vmem:[%s2920_s15 + $0x108] sm:$0xff]  ;;  %1135 = vmatprep.subr.mxu1 %v775_v25  ;;  %v642_v30 = vld [vmem:[%s2920_s15 + $0x100] sm:$0xff]  ;;  %879 = vmatpush1.msra.mxu0 %v646_v26 }
  0x50   : > { %v771_v29 = vld [vmem:[%s2920_s15 + $0x508] sm:$0xff]  ;;  %v770_v31 = vld [vmem:[%s2920_s15 + $0x500] sm:$0xff]  ;;  %1136 = vmatpush1.msra.mxu1 %v774_v27  ;;  %880 = vmatprep.subr.mxu0 %v643_v28 }
  0x51   : > { %v639_v32 = vld [vmem:[%s2920_s15 + $0xe8] sm:$0xff]  ;;  %1137 = vmatprep.subr.mxu1 %v771_v29  ;;  %v638_v34 = vld [vmem:[%s2920_s15 + $0xe0] sm:$0xff]  ;;  %881 = vmatpush1.msra.mxu0 %v642_v30 }
  0x52   : > { %v767_v33 = vld [vmem:[%s2920_s15 + $0x4e8] sm:$0xff]  ;;  %v766_v35 = vld [vmem:[%s2920_s15 + $0x4e0] sm:$0xff]  ;;  %1138 = vmatpush1.msra.mxu1 %v770_v31  ;;  %882 = vmatprep.subr.mxu0 %v639_v32 }
  0x53   : > { %v635_v36 = vld [vmem:[%s2920_s15 + $0xc8] sm:$0xff]  ;;  %1139 = vmatprep.subr.mxu1 %v767_v33  ;;  %v634_v38 = vld [vmem:[%s2920_s15 + $0xc0] sm:$0xff]  ;;  %883 = vmatpush1.msra.mxu0 %v638_v34 }
  0x54   : > { %v763_v37 = vld [vmem:[%s2920_s15 + $0x4c8] sm:$0xff]  ;;  %v762_v39 = vld [vmem:[%s2920_s15 + $0x4c0] sm:$0xff]  ;;  %1140 = vmatpush1.msra.mxu1 %v766_v35  ;;  %884 = vmatprep.subr.mxu0 %v635_v36 }
  0x55   : > { %v631_v40 = vld [vmem:[%s2920_s15 + $0xa8] sm:$0xff]  ;;  %1141 = vmatprep.subr.mxu1 %v763_v37  ;;  %v630_v42 = vld [vmem:[%s2920_s15 + $0xa0] sm:$0xff]  ;;  %885 = vmatpush1.msra.mxu0 %v634_v38 }
  0x56   : > { %v759_v41 = vld [vmem:[%s2920_s15 + $0x4a8] sm:$0xff]  ;;  %v758_v43 = vld [vmem:[%s2920_s15 + $0x4a0] sm:$0xff]  ;;  %1142 = vmatpush1.msra.mxu1 %v762_v39  ;;  %886 = vmatprep.subr.mxu0 %v631_v40 }
  0x57   : > { %v627_v44 = vld [vmem:[%s2920_s15 + $0x88] sm:$0xff]  ;;  %1143 = vmatprep.subr.mxu1 %v759_v41  ;;  %v626_v46 = vld [vmem:[%s2920_s15 + $0x80] sm:$0xff]  ;;  %887 = vmatpush1.msra.mxu0 %v630_v42 }
  0x58   : > { %v755_v45 = vld [vmem:[%s2920_s15 + $0x488] sm:$0xff]  ;;  %v754_v47 = vld [vmem:[%s2920_s15 + $0x480] sm:$0xff]  ;;  %1144 = vmatpush1.msra.mxu1 %v758_v43  ;;  %888 = vmatprep.subr.mxu0 %v627_v44 }
  0x59   : > { %v623_v48 = vld [vmem:[%s2920_s15 + $0x68] sm:$0xff]  ;;  %1145 = vmatprep.subr.mxu1 %v755_v45  ;;  %v622_v50 = vld [vmem:[%s2920_s15 + $0x60] sm:$0xff]  ;;  %889 = vmatpush1.msra.mxu0 %v626_v46 }
  0x5a   : > { %v751_v49 = vld [vmem:[%s2920_s15 + $0x468] sm:$0xff]  ;;  %v750_v51 = vld [vmem:[%s2920_s15 + $0x460] sm:$0xff]  ;;  %1146 = vmatpush1.msra.mxu1 %v754_v47  ;;  %890 = vmatprep.subr.mxu0 %v623_v48 }
  0x5b   : > { %v619_v52 = vld [vmem:[%s2920_s15 + $0x48] sm:$0xff]  ;;  %1147 = vmatprep.subr.mxu1 %v751_v49  ;;  %v618_v54 = vld [vmem:[%s2920_s15 + $0x40] sm:$0xff]  ;;  %891 = vmatpush1.msra.mxu0 %v622_v50 }
  0x5c   : > { %v747_v53 = vld [vmem:[%s2920_s15 + $0x448] sm:$0xff]  ;;  %v746_v55 = vld [vmem:[%s2920_s15 + $0x440] sm:$0xff]  ;;  %1148 = vmatpush1.msra.mxu1 %v750_v51  ;;  %892 = vmatprep.subr.mxu0 %v619_v52 }
  0x5d   : > { %v615_v56 = vld [vmem:[%s2920_s15 + $0x28] sm:$0xff]  ;;  %1149 = vmatprep.subr.mxu1 %v747_v53  ;;  %v614_v58 = vld [vmem:[%s2920_s15 + $0x20] sm:$0xff]  ;;  %893 = vmatpush1.msra.mxu0 %v618_v54 }
  0x5e   : > { %v743_v57 = vld [vmem:[%s2920_s15 + $0x428] sm:$0xff]  ;;  %v742_v59 = vld [vmem:[%s2920_s15 + $0x420] sm:$0xff]  ;;  %1150 = vmatpush1.msra.mxu1 %v746_v55  ;;  %894 = vmatprep.subr.mxu0 %v615_v56 }
  0x5f   : > { %v611_v60 = vld [vmem:[%s2920_s15 + $0x8] sm:$0xff]  ;;  %1151 = vmatprep.subr.mxu1 %v743_v57  ;;  %v610_v62 = vld [vmem:[%s2920_s15] sm:$0xff]  ;;  %895 = vmatpush1.msra.mxu0 %v614_v58 }
  0x60   : > { %v739_v61 = vld [vmem:[%s2920_s15 + $0x408] sm:$0xff]  ;;  %v738_v63 = vld [vmem:[%s2920_s15 + $0x400] sm:$0xff]  ;;  %1152 = vmatpush1.msra.mxu1 %v742_v59  ;;  %896 = vmatprep.subr.mxu0 %v611_v60 }
  0x61   : > { %v735_v0 = vld [vmem:[%s2920_s15 + $0x3e8] sm:$0xff]  ;;  %1153 = vmatprep.subr.mxu1 %v739_v61  ;;  %v734_v2 = vld [vmem:[%s2920_s15 + $0x3e0] sm:$0xff]  ;;  %897 = vmatpush1.msra.mxu0 %v610_v62 }
  0x62   : > { %v863_v1 = vld [vmem:[%s2920_s15 + $0x7e8] sm:$0xff]  ;;  %v862_v3 = vld [vmem:[%s2920_s15 + $0x7e0] sm:$0xff]  ;;  %1154 = vmatpush1.msra.mxu1 %v738_v63  ;;  %898 = vmatprep.subr.mxu0 %v735_v0 }
  0x63   : > { %v731_v4 = vld [vmem:[%s2920_s15 + $0x3c8] sm:$0xff]  ;;  %1155 = vmatprep.subr.mxu1 %v863_v1  ;;  %v730_v6 = vld [vmem:[%s2920_s15 + $0x3c0] sm:$0xff]  ;;  %899 = vmatpush2.msra.mxu0 %v734_v2  ;;  %v485_v1 = vld [vmem:[#allocation3 + $0x18] sm:$0xff] }
  0x64   : > { %v859_v5 = vld [vmem:[%s2920_s15 + $0x7c8] sm:$0xff]  ;;  %v858_v7 = vld [vmem:[%s2920_s15 + $0x7c0] sm:$0xff]  ;;  %1156 = vmatpush2.msra.mxu1 %v862_v3  ;;  %900 = vmatprep.subr.mxu0 %v731_v4  ;;  %v484_v3 = vld [vmem:[#allocation3 + $0x10] sm:$0xff] }
  0x65   : > { %v727_v8 = vld [vmem:[%s2920_s15 + $0x3a8] sm:$0xff]  ;;  %1157 = vmatprep.subr.mxu1 %v859_v5  ;;  %v726_v10 = vld [vmem:[%s2920_s15 + $0x3a0] sm:$0xff]  ;;  %901 = vmatpush2.msra.mxu0 %v730_v6  ;;  %v673_v4 = vld [vmem:[%s2920_s15 + $0x1f8] sm:$0xff] }
  0x66   : > { %v855_v9 = vld [vmem:[%s2920_s15 + $0x7a8] sm:$0xff]  ;;  %v854_v11 = vld [vmem:[%s2920_s15 + $0x7a0] sm:$0xff]  ;;  %1158 = vmatpush2.msra.mxu1 %v858_v7  ;;  %902 = vmatprep.subr.mxu0 %v727_v8  ;;  %v801_v5 = vld [vmem:[%s2920_s15 + $0x5f8] sm:$0xff] }
  0x67   : > { %v723_v12 = vld [vmem:[%s2920_s15 + $0x388] sm:$0xff]  ;;  %1159 = vmatprep.subr.mxu1 %v855_v9  ;;  %v722_v14 = vld [vmem:[%s2920_s15 + $0x380] sm:$0xff]  ;;  %903 = vmatpush2.msra.mxu0 %v726_v10  ;;  %v672_v6 = vld [vmem:[%s2920_s15 + $0x1f0] sm:$0xff] }
  0x68   : > { %v851_v13 = vld [vmem:[%s2920_s15 + $0x788] sm:$0xff]  ;;  %v850_v15 = vld [vmem:[%s2920_s15 + $0x780] sm:$0xff]  ;;  %1160 = vmatpush2.msra.mxu1 %v854_v11  ;;  %904 = vmatprep.subr.mxu0 %v723_v12  ;;  %v800_v7 = vld [vmem:[%s2920_s15 + $0x5f0] sm:$0xff] }
  0x69   : > { %v719_v16 = vld [vmem:[%s2920_s15 + $0x368] sm:$0xff]  ;;  %1161 = vmatprep.subr.mxu1 %v851_v13  ;;  %v718_v18 = vld [vmem:[%s2920_s15 + $0x360] sm:$0xff]  ;;  %905 = vmatpush2.msra.mxu0 %v722_v14  ;;  %v3060_v9 = vld [vmem:[#allocation3 + $0x38] sm:$0xff] }
  0x6a   : > { %v847_v17 = vld [vmem:[%s2920_s15 + $0x768] sm:$0xff]  ;;  %v846_v19 = vld [vmem:[%s2920_s15 + $0x760] sm:$0xff]  ;;  %1162 = vmatpush2.msra.mxu1 %v850_v15  ;;  %906 = vmatprep.subr.mxu0 %v719_v16  ;;  %v3064_v11 = vld [vmem:[#allocation3 + $0x30] sm:$0xff] }
  0x6b   : > { %v715_v20 = vld [vmem:[%s2920_s15 + $0x348] sm:$0xff]  ;;  %1163 = vmatprep.subr.mxu1 %v847_v17  ;;  %v714_v22 = vld [vmem:[%s2920_s15 + $0x340] sm:$0xff]  ;;  %907 = vmatpush2.msra.mxu0 %v718_v18  ;;  %v669_v12 = vld [vmem:[%s2920_s15 + $0x1d8] sm:$0xff] }
  0x6c   : > { %v843_v21 = vld [vmem:[%s2920_s15 + $0x748] sm:$0xff]  ;;  %v842_v23 = vld [vmem:[%s2920_s15 + $0x740] sm:$0xff]  ;;  %1164 = vmatpush2.msra.mxu1 %v846_v19  ;;  %908 = vmatprep.subr.mxu0 %v715_v20  ;;  %v797_v13 = vld [vmem:[%s2920_s15 + $0x5d8] sm:$0xff] }
  0x6d   : > { %v711_v24 = vld [vmem:[%s2920_s15 + $0x328] sm:$0xff]  ;;  %1165 = vmatprep.subr.mxu1 %v843_v21  ;;  %v710_v26 = vld [vmem:[%s2920_s15 + $0x320] sm:$0xff]  ;;  %909 = vmatpush2.msra.mxu0 %v714_v22  ;;  %v668_v14 = vld [vmem:[%s2920_s15 + $0x1d0] sm:$0xff] }
  0x6e   : > { %v839_v25 = vld [vmem:[%s2920_s15 + $0x728] sm:$0xff]  ;;  %v838_v27 = vld [vmem:[%s2920_s15 + $0x720] sm:$0xff]  ;;  %1166 = vmatpush2.msra.mxu1 %v842_v23  ;;  %910 = vmatprep.subr.mxu0 %v711_v24  ;;  %v796_v15 = vld [vmem:[%s2920_s15 + $0x5d0] sm:$0xff] }
  0x6f   : > { %v707_v28 = vld [vmem:[%s2920_s15 + $0x308] sm:$0xff]  ;;  %1167 = vmatprep.subr.mxu1 %v839_v25  ;;  %v706_v30 = vld [vmem:[%s2920_s15 + $0x300] sm:$0xff]  ;;  %911 = vmatpush2.msra.mxu0 %v710_v26  ;;  %v3076_v17 = vld [vmem:[#allocation3 + $0x58] sm:$0xff] }
  0x70   : > { %v835_v29 = vld [vmem:[%s2920_s15 + $0x708] sm:$0xff]  ;;  %v834_v31 = vld [vmem:[%s2920_s15 + $0x700] sm:$0xff]  ;;  %1168 = vmatpush2.msra.mxu1 %v838_v27  ;;  %912 = vmatprep.subr.mxu0 %v707_v28  ;;  %v3080_v19 = vld [vmem:[#allocation3 + $0x50] sm:$0xff] }
  0x71   : > { %v703_v32 = vld [vmem:[%s2920_s15 + $0x2e8] sm:$0xff]  ;;  %1169 = vmatprep.subr.mxu1 %v835_v29  ;;  %v702_v34 = vld [vmem:[%s2920_s15 + $0x2e0] sm:$0xff]  ;;  %913 = vmatpush2.msra.mxu0 %v706_v30  ;;  %v665_v20 = vld [vmem:[%s2920_s15 + $0x1b8] sm:$0xff] }
  0x72   : > { %v831_v33 = vld [vmem:[%s2920_s15 + $0x6e8] sm:$0xff]  ;;  %v830_v35 = vld [vmem:[%s2920_s15 + $0x6e0] sm:$0xff]  ;;  %1170 = vmatpush2.msra.mxu1 %v834_v31  ;;  %914 = vmatprep.subr.mxu0 %v703_v32  ;;  %v793_v21 = vld [vmem:[%s2920_s15 + $0x5b8] sm:$0xff] }
  0x73   : > { %v699_v36 = vld [vmem:[%s2920_s15 + $0x2c8] sm:$0xff]  ;;  %1171 = vmatprep.subr.mxu1 %v831_v33  ;;  %v698_v38 = vld [vmem:[%s2920_s15 + $0x2c0] sm:$0xff]  ;;  %915 = vmatpush2.msra.mxu0 %v702_v34  ;;  %v664_v22 = vld [vmem:[%s2920_s15 + $0x1b0] sm:$0xff] }
  0x74   : > { %v827_v37 = vld [vmem:[%s2920_s15 + $0x6c8] sm:$0xff]  ;;  %v826_v39 = vld [vmem:[%s2920_s15 + $0x6c0] sm:$0xff]  ;;  %1172 = vmatpush2.msra.mxu1 %v830_v35  ;;  %916 = vmatprep.subr.mxu0 %v699_v36  ;;  %v792_v23 = vld [vmem:[%s2920_s15 + $0x5b0] sm:$0xff] }
  0x75   : > { %v695_v40 = vld [vmem:[%s2920_s15 + $0x2a8] sm:$0xff]  ;;  %1173 = vmatprep.subr.mxu1 %v827_v37  ;;  %v694_v42 = vld [vmem:[%s2920_s15 + $0x2a0] sm:$0xff]  ;;  %917 = vmatpush2.msra.mxu0 %v698_v38  ;;  %v3092_v25 = vld [vmem:[#allocation3 + $0x78] sm:$0xff] }
  0x76   : > { %v823_v41 = vld [vmem:[%s2920_s15 + $0x6a8] sm:$0xff]  ;;  %v822_v43 = vld [vmem:[%s2920_s15 + $0x6a0] sm:$0xff]  ;;  %1174 = vmatpush2.msra.mxu1 %v826_v39  ;;  %918 = vmatprep.subr.mxu0 %v695_v40  ;;  %v3096_v27 = vld [vmem:[#allocation3 + $0x70] sm:$0xff] }
  0x77   : > { %v691_v44 = vld [vmem:[%s2920_s15 + $0x288] sm:$0xff]  ;;  %1175 = vmatprep.subr.mxu1 %v823_v41  ;;  %v690_v46 = vld [vmem:[%s2920_s15 + $0x280] sm:$0xff]  ;;  %919 = vmatpush2.msra.mxu0 %v694_v42  ;;  %v661_v28 = vld [vmem:[%s2920_s15 + $0x198] sm:$0xff] }
  0x78   : > { %v819_v45 = vld [vmem:[%s2920_s15 + $0x688] sm:$0xff]  ;;  %v818_v47 = vld [vmem:[%s2920_s15 + $0x680] sm:$0xff]  ;;  %1176 = vmatpush2.msra.mxu1 %v822_v43  ;;  %920 = vmatprep.subr.mxu0 %v691_v44  ;;  %v789_v29 = vld [vmem:[%s2920_s15 + $0x598] sm:$0xff] }
  0x79   : > { %v687_v48 = vld [vmem:[%s2920_s15 + $0x268] sm:$0xff]  ;;  %1177 = vmatprep.subr.mxu1 %v819_v45  ;;  %v686_v50 = vld [vmem:[%s2920_s15 + $0x260] sm:$0xff]  ;;  %921 = vmatpush2.msra.mxu0 %v690_v46  ;;  %v660_v30 = vld [vmem:[%s2920_s15 + $0x190] sm:$0xff] }
  0x7a   : > { %v815_v49 = vld [vmem:[%s2920_s15 + $0x668] sm:$0xff]  ;;  %v814_v51 = vld [vmem:[%s2920_s15 + $0x660] sm:$0xff]  ;;  %1178 = vmatpush2.msra.mxu1 %v818_v47  ;;  %922 = vmatprep.subr.mxu0 %v687_v48  ;;  %v788_v31 = vld [vmem:[%s2920_s15 + $0x590] sm:$0xff] }
  0x7b   : > { %v683_v52 = vld [vmem:[%s2920_s15 + $0x248] sm:$0xff]  ;;  %1179 = vmatprep.subr.mxu1 %v815_v49  ;;  %v682_v54 = vld [vmem:[%s2920_s15 + $0x240] sm:$0xff]  ;;  %923 = vmatpush2.msra.mxu0 %v686_v50  ;;  %v3108_v33 = vld [vmem:[#allocation3 + $0x98] sm:$0xff] }
  0x7c   : > { %v811_v53 = vld [vmem:[%s2920_s15 + $0x648] sm:$0xff]  ;;  %v810_v55 = vld [vmem:[%s2920_s15 + $0x640] sm:$0xff]  ;;  %1180 = vmatpush2.msra.mxu1 %v814_v51  ;;  %924 = vmatprep.subr.mxu0 %v683_v52  ;;  %v3112_v35 = vld [vmem:[#allocation3 + $0x90] sm:$0xff] }
  0x7d   : > { %v679_v56 = vld [vmem:[%s2920_s15 + $0x228] sm:$0xff]  ;;  %1181 = vmatprep.subr.mxu1 %v811_v53  ;;  %v678_v58 = vld [vmem:[%s2920_s15 + $0x220] sm:$0xff]  ;;  %925 = vmatpush2.msra.mxu0 %v682_v54  ;;  %v657_v36 = vld [vmem:[%s2920_s15 + $0x178] sm:$0xff] }
  0x7e   : > { %v807_v57 = vld [vmem:[%s2920_s15 + $0x628] sm:$0xff]  ;;  %v806_v59 = vld [vmem:[%s2920_s15 + $0x620] sm:$0xff]  ;;  %1182 = vmatpush2.msra.mxu1 %v810_v55  ;;  %926 = vmatprep.subr.mxu0 %v679_v56  ;;  %v785_v37 = vld [vmem:[%s2920_s15 + $0x578] sm:$0xff] }
  0x7f   : > { %v675_v60 = vld [vmem:[%s2920_s15 + $0x208] sm:$0xff]  ;;  %1183 = vmatprep.subr.mxu1 %v807_v57  ;;  %v674_v62 = vld [vmem:[%s2920_s15 + $0x200] sm:$0xff]  ;;  %927 = vmatpush2.msra.mxu0 %v678_v58  ;;  %v656_v38 = vld [vmem:[%s2920_s15 + $0x170] sm:$0xff] }
  0x80   : > { %v803_v61 = vld [vmem:[%s2920_s15 + $0x608] sm:$0xff]  ;;  %1184 = vmatpush2.msra.mxu1 %v806_v59  ;;  %v802_v0 = vld [vmem:[%s2920_s15 + $0x600] sm:$0xff]  ;;  %928 = vmatprep.subr.mxu0 %v675_v60  ;;  %v784_v39 = vld [vmem:[%s2920_s15 + $0x570] sm:$0xff] }
  0x81   : > { %v483_v63 = vld [vmem:[#allocation3 + $0x8] sm:$0xff]  ;;  %1185 = vmatprep.subr.mxu1 %v803_v61  ;;  %v482_v2 = vld [vmem:[#allocation3] sm:$0xff]  ;;  %929 = vmatpush2.msra.mxu0 %v674_v62  ;;  %v3124_v41 = vld [vmem:[#allocation3 + $0xb8] sm:$0xff] }
  0x82   : > { %930 = vmatprep.mubr.f32.mxu0 %v483_v63  ;;  %1186 = vmatpush2.msra.mxu1 %v802_v0  ;;  %v3058_v8 = vld [vmem:[#allocation3 + $0x28] sm:$0xff]  ;;  %v3062_v10 = vld [vmem:[#allocation3 + $0x20] sm:$0xff]  ;;  %v3128_v43 = vld [vmem:[#allocation3 + $0xb0] sm:$0xff] }
  0x83   : > { %1187 = vmatprep.mubr.f32.mxu1 %v485_v1  ;;  %931 = vmatmul.mubr.f32.vlgmr.msra.gmra.mxu0 %v482_v2  ;;  %v3074_v16 = vld [vmem:[#allocation3 + $0x48] sm:$0xff]  ;;  %v3078_v18 = vld [vmem:[#allocation3 + $0x40] sm:$0xff]  ;;  %v653_v44 = vld [vmem:[%s2920_s15 + $0x158] sm:$0xff] }
  0x84   : > { %1188 = vmatmul.mubr.f32.vlgmr.msra.gmra.mxu1 %v484_v3  ;;  %1380 = vmatprep.subr.mxu0 %v673_v4  ;;  %v3090_v24 = vld [vmem:[#allocation3 + $0x68] sm:$0xff]  ;;  %v3094_v26 = vld [vmem:[#allocation3 + $0x60] sm:$0xff]  ;;  %v781_v45 = vld [vmem:[%s2920_s15 + $0x558] sm:$0xff] }
  0x85   : > { %1637 = vmatprep.subr.mxu1 %v801_v5  ;;  %1381 = vmatpush1.msra.mxu0 %v672_v6  ;;  %v3106_v32 = vld [vmem:[#allocation3 + $0x88] sm:$0xff]  ;;  %v3110_v34 = vld [vmem:[#allocation3 + $0x80] sm:$0xff]  ;;  %v652_v46 = vld [vmem:[%s2920_s15 + $0x150] sm:$0xff] }
  0x86   : > { %1638 = vmatpush1.msra.mxu1 %v800_v7  ;;  %936 = vmatprep.mubr.f32.mxu0 %v3058_v8  ;;  %v3122_v40 = vld [vmem:[#allocation3 + $0xa8] sm:$0xff]  ;;  %v3126_v42 = vld [vmem:[#allocation3 + $0xa0] sm:$0xff]  ;;  %v780_v47 = vld [vmem:[%s2920_s15 + $0x550] sm:$0xff] }
  0x87   : > { %1193 = vmatprep.mubr.f32.mxu1 %v3060_v9  ;;  %937 = vmatmul.mubr.f32.gmra.mxu0 %v3062_v10  ;;  %v3138_v48 = vld [vmem:[#allocation3 + $0xc8] sm:$0xff]  ;;  %v3140_v49 = vld [vmem:[#allocation3 + $0xd8] sm:$0xff]  ;;  %v3142_v50 = vld [vmem:[#allocation3 + $0xc0] sm:$0xff] }
  0x88   : > { %1194 = vmatmul.mubr.f32.gmra.mxu1 %v3064_v11  ;;  %1382 = vmatprep.subr.mxu0 %v669_v12  ;;  %v3144_v51 = vld [vmem:[#allocation3 + $0xd0] sm:$0xff]  ;;  %v649_v52 = vld [vmem:[%s2920_s15 + $0x138] sm:$0xff]  ;;  %v3154_v56 = vld [vmem:[#allocation3 + $0xe8] sm:$0xff] }
  0x89   : > { %1639 = vmatprep.subr.mxu1 %v797_v13  ;;  %1383 = vmatpush1.msra.mxu0 %v668_v14  ;;  %v777_v53 = vld [vmem:[%s2920_s15 + $0x538] sm:$0xff]  ;;  %v648_v54 = vld [vmem:[%s2920_s15 + $0x130] sm:$0xff]  ;;  %v3158_v58 = vld [vmem:[#allocation3 + $0xe0] sm:$0xff] }
  0x8a   : > { %1640 = vmatpush1.msra.mxu1 %v796_v15  ;;  %942 = vmatprep.mubr.f32.mxu0 %v3074_v16  ;;  %v776_v55 = vld [vmem:[%s2920_s15 + $0x530] sm:$0xff]  ;;  %v3156_v57 = vld [vmem:[#allocation3 + $0xf8] sm:$0xff]  ;;  %v3170_v0 = vld [vmem:[#allocation3 + $0x108] sm:$0xff] }
  0x8b   : > { %1199 = vmatprep.mubr.f32.mxu1 %v3076_v17  ;;  %943 = vmatmul.mubr.f32.gmra.mxu0 %v3078_v18  ;;  %v3160_v59 = vld [vmem:[#allocation3 + $0xf0] sm:$0xff]  ;;  %v645_v60 = vld [vmem:[%s2920_s15 + $0x118] sm:$0xff]  ;;  %v3174_v2 = vld [vmem:[#allocation3 + $0x100] sm:$0xff] }
  0x8c   : > { %1200 = vmatmul.mubr.f32.gmra.mxu1 %v3080_v19  ;;  %1384 = vmatprep.subr.mxu0 %v665_v20  ;;  %v773_v61 = vld [vmem:[%s2920_s15 + $0x518] sm:$0xff]  ;;  %v644_v62 = vld [vmem:[%s2920_s15 + $0x110] sm:$0xff]  ;;  %v3186_v12 = vld [vmem:[#allocation3 + $0x128] sm:$0xff] }
  0x8d   : > { %1641 = vmatprep.subr.mxu1 %v793_v21  ;;  %1385 = vmatpush1.msra.mxu0 %v664_v22  ;;  %v772_v63 = vld [vmem:[%s2920_s15 + $0x510] sm:$0xff]  ;;  %v3172_v1 = vld [vmem:[#allocation3 + $0x118] sm:$0xff]  ;;  %v3190_v14 = vld [vmem:[#allocation3 + $0x120] sm:$0xff] }
  0x8e   : > { %1642 = vmatpush1.msra.mxu1 %v792_v23  ;;  %948 = vmatprep.mubr.f32.mxu0 %v3090_v24  ;;  %v3176_v3 = vld [vmem:[#allocation3 + $0x110] sm:$0xff]  ;;  %v641_v4 = vld [vmem:[%s2920_s15 + $0xf8] sm:$0xff] }
  0x8f   : > { %1205 = vmatprep.mubr.f32.mxu1 %v3092_v25  ;;  %949 = vmatmul.mubr.f32.gmra.mxu0 %v3094_v26  ;;  %v769_v5 = vld [vmem:[%s2920_s15 + $0x4f8] sm:$0xff]  ;;  %v640_v6 = vld [vmem:[%s2920_s15 + $0xf0] sm:$0xff] }
  0x90   : > { %1206 = vmatmul.mubr.f32.gmra.mxu1 %v3096_v27  ;;  %1386 = vmatprep.subr.mxu0 %v661_v28  ;;  %v768_v7 = vld [vmem:[%s2920_s15 + $0x4f0] sm:$0xff]  ;;  %v3188_v13 = vld [vmem:[#allocation3 + $0x138] sm:$0xff]  ;;  %v3202_v28 = vld [vmem:[#allocation3 + $0x148] sm:$0xff] }
  0x91   : > { %1643 = vmatprep.subr.mxu1 %v789_v29  ;;  %1387 = vmatpush1.msra.mxu0 %v660_v30  ;;  %v3192_v15 = vld [vmem:[#allocation3 + $0x130] sm:$0xff]  ;;  %v637_v20 = vld [vmem:[%s2920_s15 + $0xd8] sm:$0xff]  ;;  %v3206_v30 = vld [vmem:[#allocation3 + $0x140] sm:$0xff] }
  0x92   : > { %1644 = vmatpush1.msra.mxu1 %v788_v31  ;;  %954 = vmatprep.mubr.f32.mxu0 %v3106_v32  ;;  %v765_v21 = vld [vmem:[%s2920_s15 + $0x4d8] sm:$0xff]  ;;  %v636_v22 = vld [vmem:[%s2920_s15 + $0xd0] sm:$0xff] }
  0x93   : > { %1211 = vmatprep.mubr.f32.mxu1 %v3108_v33  ;;  %955 = vmatmul.mubr.f32.gmra.mxu0 %v3110_v34  ;;  %v764_v23 = vld [vmem:[%s2920_s15 + $0x4d0] sm:$0xff]  ;;  %v3204_v29 = vld [vmem:[#allocation3 + $0x158] sm:$0xff] }
  0x94   : > { %1212 = vmatmul.mubr.f32.gmra.mxu1 %v3112_v35  ;;  %1388 = vmatprep.subr.mxu0 %v657_v36  ;;  %v3208_v31 = vld [vmem:[#allocation3 + $0x150] sm:$0xff]  ;;  %v633_v36 = vld [vmem:[%s2920_s15 + $0xb8] sm:$0xff] }
  0x95   : > { %1645 = vmatprep.subr.mxu1 %v785_v37  ;;  %1389 = vmatpush1.msra.mxu0 %v656_v38  ;;  %v761_v37 = vld [vmem:[%s2920_s15 + $0x4b8] sm:$0xff]  ;;  %v632_v38 = vld [vmem:[%s2920_s15 + $0xb0] sm:$0xff] }
  0x96   : > { %1646 = vmatpush1.msra.mxu1 %v784_v39  ;;  %960 = vmatprep.mubr.f32.mxu0 %v3122_v40  ;;  %v760_v39 = vld [vmem:[%s2920_s15 + $0x4b0] sm:$0xff] }
  0x97   : > { %1217 = vmatprep.mubr.f32.mxu1 %v3124_v41  ;;  %961 = vmatmul.mubr.f32.gmra.mxu0 %v3126_v42 }
  0x98   : > { %1218 = vmatmul.mubr.f32.gmra.mxu1 %v3128_v43  ;;  %1390 = vmatprep.subr.mxu0 %v653_v44  ;;  %v3218_v44 = vld [vmem:[#allocation3 + $0x168] sm:$0xff] }
  0x99   : > { %1647 = vmatprep.subr.mxu1 %v781_v45  ;;  %1391 = vmatpush1.msra.mxu0 %v652_v46  ;;  %v3220_v45 = vld [vmem:[#allocation3 + $0x178] sm:$0xff]  ;;  %v3222_v46 = vld [vmem:[#allocation3 + $0x160] sm:$0xff] }
  0x9a   : > { %1648 = vmatpush1.msra.mxu1 %v780_v47  ;;  %966 = vmatprep.mubr.f32.mxu0 %v3138_v48  ;;  %v3224_v47 = vld [vmem:[#allocation3 + $0x170] sm:$0xff] }
  0x9b   : > { %1223 = vmatprep.mubr.f32.mxu1 %v3140_v49  ;;  %967 = vmatmul.mubr.f32.gmra.mxu0 %v3142_v50 }
  0x9c   : > { %1224 = vmatmul.mubr.f32.gmra.mxu1 %v3144_v51  ;;  %1392 = vmatprep.subr.mxu0 %v649_v52  ;;  %v629_v52 = vld [vmem:[%s2920_s15 + $0x98] sm:$0xff] }
  0x9d   : > { %1649 = vmatprep.subr.mxu1 %v777_v53  ;;  %1393 = vmatpush1.msra.mxu0 %v648_v54  ;;  %v757_v53 = vld [vmem:[%s2920_s15 + $0x498] sm:$0xff]  ;;  %v628_v54 = vld [vmem:[%s2920_s15 + $0x90] sm:$0xff] }
  0x9e   : > { %1650 = vmatpush1.msra.mxu1 %v776_v55  ;;  %972 = vmatprep.mubr.f32.mxu0 %v3154_v56  ;;  %v756_v55 = vld [vmem:[%s2920_s15 + $0x490] sm:$0xff] }
  0x9f   : > { %1229 = vmatprep.mubr.f32.mxu1 %v3156_v57  ;;  %973 = vmatmul.mubr.f32.gmra.mxu0 %v3158_v58 }
  0xa0   : > { %1230 = vmatmul.mubr.f32.gmra.mxu1 %v3160_v59  ;;  %1394 = vmatprep.subr.mxu0 %v645_v60  ;;  %v3234_v60 = vld [vmem:[#allocation3 + $0x188] sm:$0xff] }
  0xa1   : > { %1651 = vmatprep.subr.mxu1 %v773_v61  ;;  %1395 = vmatpush1.msra.mxu0 %v644_v62  ;;  %v3236_v61 = vld [vmem:[#allocation3 + $0x198] sm:$0xff]  ;;  %v3238_v62 = vld [vmem:[#allocation3 + $0x180] sm:$0xff] }
  0xa2   : > { %1652 = vmatpush1.msra.mxu1 %v772_v63  ;;  %978 = vmatprep.mubr.f32.mxu0 %v3170_v0  ;;  %v3240_v63 = vld [vmem:[#allocation3 + $0x190] sm:$0xff] }
  0xa3   : > { %1235 = vmatprep.mubr.f32.mxu1 %v3172_v1  ;;  %979 = vmatmul.mubr.f32.gmra.mxu0 %v3174_v2 }
  0xa4   : > { %1236 = vmatmul.mubr.f32.gmra.mxu1 %v3176_v3  ;;  %1396 = vmatprep.subr.mxu0 %v641_v4  ;;  %v625_v4 = vld [vmem:[%s2920_s15 + $0x78] sm:$0xff] }
  0xa5   : > { %1653 = vmatprep.subr.mxu1 %v769_v5  ;;  %1397 = vmatpush1.msra.mxu0 %v640_v6  ;;  %v753_v5 = vld [vmem:[%s2920_s15 + $0x478] sm:$0xff]  ;;  %v624_v6 = vld [vmem:[%s2920_s15 + $0x70] sm:$0xff] }
  0xa6   : > { %1654 = vmatpush1.msra.mxu1 %v768_v7  ;;  %984 = vmatprep.mubr.f32.mxu0 %v3186_v12  ;;  %v752_v7 = vld [vmem:[%s2920_s15 + $0x470] sm:$0xff] }
  0xa7   : > { %1241 = vmatprep.mubr.f32.mxu1 %v3188_v13  ;;  %985 = vmatmul.mubr.f32.gmra.mxu0 %v3190_v14 }
  0xa8   : > { %1242 = vmatmul.mubr.f32.gmra.mxu1 %v3192_v15  ;;  %1398 = vmatprep.subr.mxu0 %v637_v20  ;;  %v3250_v20 = vld [vmem:[#allocation3 + $0x1a8] sm:$0xff] }
  0xa9   : > { %1655 = vmatprep.subr.mxu1 %v765_v21  ;;  %1399 = vmatpush1.msra.mxu0 %v636_v22  ;;  %v3252_v21 = vld [vmem:[#allocation3 + $0x1b8] sm:$0xff]  ;;  %v3254_v22 = vld [vmem:[#allocation3 + $0x1a0] sm:$0xff] }
  0xaa   : > { %1656 = vmatpush1.msra.mxu1 %v764_v23  ;;  %990 = vmatprep.mubr.f32.mxu0 %v3202_v28  ;;  %v3256_v23 = vld [vmem:[#allocation3 + $0x1b0] sm:$0xff] }
  0xab   : > { %1247 = vmatprep.mubr.f32.mxu1 %v3204_v29  ;;  %991 = vmatmul.mubr.f32.gmra.mxu0 %v3206_v30 }
  0xac   : > { %1248 = vmatmul.mubr.f32.gmra.mxu1 %v3208_v31  ;;  %1400 = vmatprep.subr.mxu0 %v633_v36  ;;  %v621_v36 = vld [vmem:[%s2920_s15 + $0x58] sm:$0xff] }
  0xad   : > { %1657 = vmatprep.subr.mxu1 %v761_v37  ;;  %1401 = vmatpush1.msra.mxu0 %v632_v38  ;;  %v749_v37 = vld [vmem:[%s2920_s15 + $0x458] sm:$0xff]  ;;  %v620_v38 = vld [vmem:[%s2920_s15 + $0x50] sm:$0xff] }
  0xae   : > { %1658 = vmatpush1.msra.mxu1 %v760_v39  ;;  %996 = vmatprep.mubr.f32.mxu0 %v3218_v44  ;;  %v748_v39 = vld [vmem:[%s2920_s15 + $0x450] sm:$0xff] }
  0xaf   : > { %1253 = vmatprep.mubr.f32.mxu1 %v3220_v45  ;;  %997 = vmatmul.mubr.f32.gmra.mxu0 %v3222_v46 }
  0xb0   : > { %1254 = vmatmul.mubr.f32.gmra.mxu1 %v3224_v47  ;;  %1402 = vmatprep.subr.mxu0 %v629_v52  ;;  %v3266_v52 = vld [vmem:[#allocation3 + $0x1c8] sm:$0xff] }
  0xb1   : > { %1659 = vmatprep.subr.mxu1 %v757_v53  ;;  %1403 = vmatpush1.msra.mxu0 %v628_v54  ;;  %3949 = vst [vmem:[#allocation13_spill] sm:$0xff] %v3266_v52  ;;  %v3268_v53 = vld [vmem:[#allocation3 + $0x1d8] sm:$0xff]  ;;  %v3270_v54 = vld [vmem:[#allocation3 + $0x1c0] sm:$0xff] }
  0xb2   : > { %1660 = vmatpush1.msra.mxu1 %v756_v55  ;;  %1002 = vmatprep.mubr.f32.mxu0 %v3234_v60  ;;  %3950 = vst [vmem:[#allocation14_spill] sm:$0xff] %v3268_v53  ;;  %3951 = vst [vmem:[#allocation15_spill] sm:$0xff] %v3270_v54  ;;  %v3272_v55 = vld [vmem:[#allocation3 + $0x1d0] sm:$0xff] }
  0xb3   : > { %1259 = vmatprep.mubr.f32.mxu1 %v3236_v61  ;;  %1003 = vmatmul.mubr.f32.gmra.mxu0 %v3238_v62  ;;  %3952 = vst [vmem:[#allocation16_spill] sm:$0xff] %v3272_v55 }
  0xb4   : > { %1260 = vmatmul.mubr.f32.gmra.mxu1 %v3240_v63  ;;  %1404 = vmatprep.subr.mxu0 %v625_v4  ;;  %v617_v4 = vld [vmem:[%s2920_s15 + $0x38] sm:$0xff] }
  0xb5   : > { %1661 = vmatprep.subr.mxu1 %v753_v5  ;;  %1405 = vmatpush1.msra.mxu0 %v624_v6  ;;  %v745_v5 = vld [vmem:[%s2920_s15 + $0x438] sm:$0xff]  ;;  %v616_v6 = vld [vmem:[%s2920_s15 + $0x30] sm:$0xff] }
  0xb6   : > { %1662 = vmatpush1.msra.mxu1 %v752_v7  ;;  %1008 = vmatprep.mubr.f32.mxu0 %v3250_v20  ;;  %v744_v7 = vld [vmem:[%s2920_s15 + $0x430] sm:$0xff] }
  0xb7   : > { %1265 = vmatprep.mubr.f32.mxu1 %v3252_v21  ;;  %1009 = vmatmul.mubr.f32.gmra.mxu0 %v3254_v22 }
  0xb8   : > { %1266 = vmatmul.mubr.f32.gmra.mxu1 %v3256_v23  ;;  %1406 = vmatprep.subr.mxu0 %v621_v36  ;;  %v3282_v36 = vld [vmem:[#allocation3 + $0x1e8] sm:$0xff] }
  0xb9   : > { %1663 = vmatprep.subr.mxu1 %v749_v37  ;;  %1407 = vmatpush1.msra.mxu0 %v620_v38  ;;  %3953 = vst [vmem:[#allocation17_spill] sm:$0xff] %v3282_v36  ;;  %v3284_v37 = vld [vmem:[#allocation3 + $0x1f8] sm:$0xff]  ;;  %v3286_v38 = vld [vmem:[#allocation3 + $0x1e0] sm:$0xff] }
  0xba   : > { %1664 = vmatpush1.msra.mxu1 %v748_v39  ;;  %1014 = vmatprep.mubr.f32.mxu0 %v3266_v52  ;;  %3954 = vst [vmem:[#allocation18_spill] sm:$0xff] %v3284_v37  ;;  %3955 = vst [vmem:[#allocation19_spill] sm:$0xff] %v3286_v38  ;;  %v3288_v39 = vld [vmem:[#allocation3 + $0x1f0] sm:$0xff]  ;;  %v741_v52 = vld [vmem:[%s2920_s15 + $0x418] sm:$0xff] }
  0xbb   : > { %1271 = vmatprep.mubr.f32.mxu1 %v3268_v53  ;;  %1015 = vmatmul.mubr.f32.gmra.mxu0 %v3270_v54  ;;  %3956 = vst [vmem:[#allocation20_spill] sm:$0xff] %v3288_v39  ;;  %v613_v53 = vld [vmem:[%s2920_s15 + $0x18] sm:$0xff]  ;;  %v740_v54 = vld [vmem:[%s2920_s15 + $0x410] sm:$0xff] }
  0xbc   : > { %1272 = vmatmul.mubr.f32.gmra.mxu1 %v3272_v55  ;;  %1408 = vmatprep.subr.mxu0 %v617_v4  ;;  %v612_v55 = vld [vmem:[%s2920_s15 + $0x10] sm:$0xff]  ;;  %v3298_v4 = vld [vmem:[#allocation3 + $0x208] sm:$0xff] }
  0xbd   : > { %1665 = vmatprep.subr.mxu1 %v745_v5  ;;  %1409 = vmatpush1.msra.mxu0 %v616_v6  ;;  %3957 = vst [vmem:[#allocation21_spill] sm:$0xff] %v3298_v4  ;;  %v3300_v5 = vld [vmem:[#allocation3 + $0x218] sm:$0xff]  ;;  %v3302_v6 = vld [vmem:[#allocation3 + $0x200] sm:$0xff] }
  0xbe   : > { %1666 = vmatpush1.msra.mxu1 %v744_v7  ;;  %1020 = vmatprep.mubr.f32.mxu0 %v3282_v36  ;;  %3958 = vst [vmem:[#allocation22_spill] sm:$0xff] %v3300_v5  ;;  %3959 = vst [vmem:[#allocation23_spill] sm:$0xff] %v3302_v6  ;;  %v3304_v7 = vld [vmem:[#allocation3 + $0x210] sm:$0xff]  ;;  %v865_v36 = vld [vmem:[%s2920_s15 + $0x7f8] sm:$0xff] }
  0xbf   : > { %1277 = vmatprep.mubr.f32.mxu1 %v3284_v37  ;;  %1021 = vmatmul.mubr.f32.gmra.mxu0 %v3286_v38  ;;  %3960 = vst [vmem:[#allocation24_spill] sm:$0xff] %v3304_v7  ;;  %v737_v37 = vld [vmem:[%s2920_s15 + $0x3f8] sm:$0xff]  ;;  %v864_v38 = vld [vmem:[%s2920_s15 + $0x7f0] sm:$0xff] }
  0xc0   : > { %1278 = vmatmul.mubr.f32.gmra.mxu1 %v3288_v39  ;;  %1410 = vmatprep.subr.mxu0 %v613_v53  ;;  %v736_v39 = vld [vmem:[%s2920_s15 + $0x3f0] sm:$0xff]  ;;  %v3316_v53 = vld [vmem:[#allocation3 + $0x238] sm:$0xff] }
  0xc1   : > { %1667 = vmatprep.subr.mxu1 %v741_v52  ;;  %1411 = vmatpush1.msra.mxu0 %v612_v55  ;;  %v3314_v52 = vld [vmem:[#allocation3 + $0x228] sm:$0xff]  ;;  %3962 = vst [vmem:[#allocation26_spill] sm:$0xff] %v3316_v53  ;;  %v3320_v55 = vld [vmem:[#allocation3 + $0x230] sm:$0xff] }
  0xc2   : > { %1668 = vmatpush1.msra.mxu1 %v740_v54  ;;  %1026 = vmatprep.mubr.f32.mxu0 %v3298_v4  ;;  %3961 = vst [vmem:[#allocation25_spill] sm:$0xff] %v3314_v52  ;;  %v3318_v54 = vld [vmem:[#allocation3 + $0x220] sm:$0xff]  ;;  %3964 = vst [vmem:[#allocation28_spill] sm:$0xff] %v3320_v55  ;;  %v861_v4 = vld [vmem:[%s2920_s15 + $0x7d8] sm:$0xff] }
  0xc3   : > { %1283 = vmatprep.mubr.f32.mxu1 %v3300_v5  ;;  %1027 = vmatmul.mubr.f32.gmra.mxu0 %v3302_v6  ;;  %3963 = vst [vmem:[#allocation27_spill] sm:$0xff] %v3318_v54  ;;  %v733_v5 = vld [vmem:[%s2920_s15 + $0x3d8] sm:$0xff]  ;;  %v860_v6 = vld [vmem:[%s2920_s15 + $0x7d0] sm:$0xff] }
  0xc4   : > { %1284 = vmatmul.mubr.f32.gmra.mxu1 %v3304_v7  ;;  %1412 = vmatprep.subr.mxu0 %v737_v37  ;;  %v732_v7 = vld [vmem:[%s2920_s15 + $0x3d0] sm:$0xff]  ;;  %v3332_v37 = vld [vmem:[#allocation3 + $0x258] sm:$0xff] }
  0xc5   : > { %1669 = vmatprep.subr.mxu1 %v865_v36  ;;  %1413 = vmatpush2.msra.mxu0 %v736_v39  ;;  %v3330_v36 = vld [vmem:[#allocation3 + $0x248] sm:$0xff]  ;;  %3966 = vst [vmem:[#allocation30_spill] sm:$0xff] %v3332_v37  ;;  %v3336_v39 = vld [vmem:[#allocation3 + $0x250] sm:$0xff] }
  0xc6   : > { %1670 = vmatpush2.msra.mxu1 %v864_v38  ;;  %1032 = vmatprep.mubr.f32.mxu0 %v3314_v52  ;;  %3965 = vst [vmem:[#allocation29_spill] sm:$0xff] %v3330_v36  ;;  %v3334_v38 = vld [vmem:[#allocation3 + $0x240] sm:$0xff]  ;;  %3968 = vst [vmem:[#allocation32_spill] sm:$0xff] %v3336_v39  ;;  %v857_v52 = vld [vmem:[%s2920_s15 + $0x7b8] sm:$0xff] }
  0xc7   : > { %1289 = vmatprep.mubr.f32.mxu1 %v3316_v53  ;;  %1033 = vmatmul.mubr.f32.gmra.mxu0 %v3318_v54  ;;  %3967 = vst [vmem:[#allocation31_spill] sm:$0xff] %v3334_v38  ;;  %v729_v53 = vld [vmem:[%s2920_s15 + $0x3b8] sm:$0xff]  ;;  %v856_v54 = vld [vmem:[%s2920_s15 + $0x7b0] sm:$0xff] }
  0xc8   : > { %1290 = vmatmul.mubr.f32.gmra.mxu1 %v3320_v55  ;;  %1414 = vmatprep.subr.mxu0 %v733_v5  ;;  %v728_v55 = vld [vmem:[%s2920_s15 + $0x3b0] sm:$0xff]  ;;  %v3348_v5 = vld [vmem:[#allocation3 + $0x278] sm:$0xff] }
  0xc9   : > { %1671 = vmatprep.subr.mxu1 %v861_v4  ;;  %1415 = vmatpush2.msra.mxu0 %v732_v7  ;;  %v3346_v4 = vld [vmem:[#allocation3 + $0x268] sm:$0xff]  ;;  %3970 = vst [vmem:[#allocation34_spill] sm:$0xff] %v3348_v5  ;;  %v3352_v7 = vld [vmem:[#allocation3 + $0x270] sm:$0xff] }
  0xca   : > { %1672 = vmatpush2.msra.mxu1 %v860_v6  ;;  %1038 = vmatprep.mubr.f32.mxu0 %v3330_v36  ;;  %3969 = vst [vmem:[#allocation33_spill] sm:$0xff] %v3346_v4  ;;  %v3350_v6 = vld [vmem:[#allocation3 + $0x260] sm:$0xff]  ;;  %3972 = vst [vmem:[#allocation36_spill] sm:$0xff] %v3352_v7  ;;  %v853_v36 = vld [vmem:[%s2920_s15 + $0x798] sm:$0xff] }
  0xcb   : > { %1295 = vmatprep.mubr.f32.mxu1 %v3332_v37  ;;  %1039 = vmatmul.mubr.f32.gmra.mxu0 %v3334_v38  ;;  %3971 = vst [vmem:[#allocation35_spill] sm:$0xff] %v3350_v6  ;;  %v725_v37 = vld [vmem:[%s2920_s15 + $0x398] sm:$0xff]  ;;  %v852_v38 = vld [vmem:[%s2920_s15 + $0x790] sm:$0xff] }
  0xcc   : > { %1296 = vmatmul.mubr.f32.gmra.mxu1 %v3336_v39  ;;  %1416 = vmatprep.subr.mxu0 %v729_v53  ;;  %v724_v39 = vld [vmem:[%s2920_s15 + $0x390] sm:$0xff]  ;;  %v3364_v53 = vld [vmem:[#allocation3 + $0x298] sm:$0xff] }
  0xcd   : > { %1673 = vmatprep.subr.mxu1 %v857_v52  ;;  %1417 = vmatpush2.msra.mxu0 %v728_v55  ;;  %v3362_v52 = vld [vmem:[#allocation3 + $0x288] sm:$0xff]  ;;  %3974 = vst [vmem:[#allocation38_spill] sm:$0xff] %v3364_v53  ;;  %v3368_v55 = vld [vmem:[#allocation3 + $0x290] sm:$0xff] }
  0xce   : > { %1674 = vmatpush2.msra.mxu1 %v856_v54  ;;  %1044 = vmatprep.mubr.f32.mxu0 %v3346_v4  ;;  %3973 = vst [vmem:[#allocation37_spill] sm:$0xff] %v3362_v52  ;;  %v3366_v54 = vld [vmem:[#allocation3 + $0x280] sm:$0xff]  ;;  %3976 = vst [vmem:[#allocation40_spill] sm:$0xff] %v3368_v55  ;;  %v849_v4 = vld [vmem:[%s2920_s15 + $0x778] sm:$0xff] }
  0xcf   : > { %1301 = vmatprep.mubr.f32.mxu1 %v3348_v5  ;;  %1045 = vmatmul.mubr.f32.gmra.mxu0 %v3350_v6  ;;  %3975 = vst [vmem:[#allocation39_spill] sm:$0xff] %v3366_v54  ;;  %v721_v5 = vld [vmem:[%s2920_s15 + $0x378] sm:$0xff]  ;;  %v848_v6 = vld [vmem:[%s2920_s15 + $0x770] sm:$0xff] }
  0xd0   : > { %1302 = vmatmul.mubr.f32.gmra.mxu1 %v3352_v7  ;;  %1418 = vmatprep.subr.mxu0 %v725_v37  ;;  %v720_v7 = vld [vmem:[%s2920_s15 + $0x370] sm:$0xff]  ;;  %v3380_v37 = vld [vmem:[#allocation3 + $0x2b8] sm:$0xff] }
  0xd1   : > { %1675 = vmatprep.subr.mxu1 %v853_v36  ;;  %1419 = vmatpush2.msra.mxu0 %v724_v39  ;;  %v3378_v36 = vld [vmem:[#allocation3 + $0x2a8] sm:$0xff]  ;;  %3978 = vst [vmem:[#allocation42_spill] sm:$0xff] %v3380_v37  ;;  %v3384_v39 = vld [vmem:[#allocation3 + $0x2b0] sm:$0xff] }
  0xd2   : > { %1676 = vmatpush2.msra.mxu1 %v852_v38  ;;  %1050 = vmatprep.mubr.f32.mxu0 %v3362_v52  ;;  %3977 = vst [vmem:[#allocation41_spill] sm:$0xff] %v3378_v36  ;;  %v3382_v38 = vld [vmem:[#allocation3 + $0x2a0] sm:$0xff]  ;;  %3980 = vst [vmem:[#allocation44_spill] sm:$0xff] %v3384_v39  ;;  %v845_v52 = vld [vmem:[%s2920_s15 + $0x758] sm:$0xff] }
  0xd3   : > { %1307 = vmatprep.mubr.f32.mxu1 %v3364_v53  ;;  %1051 = vmatmul.mubr.f32.gmra.mxu0 %v3366_v54  ;;  %3979 = vst [vmem:[#allocation43_spill] sm:$0xff] %v3382_v38  ;;  %v717_v53 = vld [vmem:[%s2920_s15 + $0x358] sm:$0xff]  ;;  %v844_v54 = vld [vmem:[%s2920_s15 + $0x750] sm:$0xff] }
  0xd4   : > { %1308 = vmatmul.mubr.f32.gmra.mxu1 %v3368_v55  ;;  %1420 = vmatprep.subr.mxu0 %v721_v5  ;;  %v716_v55 = vld [vmem:[%s2920_s15 + $0x350] sm:$0xff]  ;;  %v3396_v5 = vld [vmem:[#allocation3 + $0x2d8] sm:$0xff] }
  0xd5   : > { %1677 = vmatprep.subr.mxu1 %v849_v4  ;;  %1421 = vmatpush2.msra.mxu0 %v720_v7  ;;  %v3394_v4 = vld [vmem:[#allocation3 + $0x2c8] sm:$0xff]  ;;  %3982 = vst [vmem:[#allocation46_spill] sm:$0xff] %v3396_v5  ;;  %v3400_v7 = vld [vmem:[#allocation3 + $0x2d0] sm:$0xff] }
  0xd6   : > { %1678 = vmatpush2.msra.mxu1 %v848_v6  ;;  %1056 = vmatprep.mubr.f32.mxu0 %v3378_v36  ;;  %3981 = vst [vmem:[#allocation45_spill] sm:$0xff] %v3394_v4  ;;  %v3398_v6 = vld [vmem:[#allocation3 + $0x2c0] sm:$0xff]  ;;  %3984 = vst [vmem:[#allocation48_spill] sm:$0xff] %v3400_v7  ;;  %v841_v36 = vld [vmem:[%s2920_s15 + $0x738] sm:$0xff] }
  0xd7   : > { %1313 = vmatprep.mubr.f32.mxu1 %v3380_v37  ;;  %1057 = vmatmul.mubr.f32.gmra.mxu0 %v3382_v38  ;;  %3983 = vst [vmem:[#allocation47_spill] sm:$0xff] %v3398_v6  ;;  %v713_v37 = vld [vmem:[%s2920_s15 + $0x338] sm:$0xff]  ;;  %v840_v38 = vld [vmem:[%s2920_s15 + $0x730] sm:$0xff] }
  0xd8   : > { %1314 = vmatmul.mubr.f32.gmra.mxu1 %v3384_v39  ;;  %1422 = vmatprep.subr.mxu0 %v717_v53  ;;  %v712_v39 = vld [vmem:[%s2920_s15 + $0x330] sm:$0xff]  ;;  %v3412_v53 = vld [vmem:[#allocation3 + $0x2f8] sm:$0xff] }
  0xd9   : > { %1679 = vmatprep.subr.mxu1 %v845_v52  ;;  %1423 = vmatpush2.msra.mxu0 %v716_v55  ;;  %v3410_v52 = vld [vmem:[#allocation3 + $0x2e8] sm:$0xff]  ;;  %3986 = vst [vmem:[#allocation50_spill] sm:$0xff] %v3412_v53  ;;  %v3416_v55 = vld [vmem:[#allocation3 + $0x2f0] sm:$0xff] }
  0xda   : > { %1680 = vmatpush2.msra.mxu1 %v844_v54  ;;  %1062 = vmatprep.mubr.f32.mxu0 %v3394_v4  ;;  %3985 = vst [vmem:[#allocation49_spill] sm:$0xff] %v3410_v52  ;;  %v3414_v54 = vld [vmem:[#allocation3 + $0x2e0] sm:$0xff]  ;;  %3988 = vst [vmem:[#allocation52_spill] sm:$0xff] %v3416_v55  ;;  %v837_v4 = vld [vmem:[%s2920_s15 + $0x718] sm:$0xff] }
  0xdb   : > { %1319 = vmatprep.mubr.f32.mxu1 %v3396_v5  ;;  %1063 = vmatmul.mubr.f32.gmra.mxu0 %v3398_v6  ;;  %3987 = vst [vmem:[#allocation51_spill] sm:$0xff] %v3414_v54  ;;  %v709_v5 = vld [vmem:[%s2920_s15 + $0x318] sm:$0xff]  ;;  %v836_v6 = vld [vmem:[%s2920_s15 + $0x710] sm:$0xff] }
  0xdc   : > { %1320 = vmatmul.mubr.f32.gmra.mxu1 %v3400_v7  ;;  %1424 = vmatprep.subr.mxu0 %v713_v37  ;;  %v708_v7 = vld [vmem:[%s2920_s15 + $0x310] sm:$0xff]  ;;  %v3428_v37 = vld [vmem:[#allocation3 + $0x318] sm:$0xff] }
  0xdd   : > { %1681 = vmatprep.subr.mxu1 %v841_v36  ;;  %1425 = vmatpush2.msra.mxu0 %v712_v39  ;;  %v3426_v36 = vld [vmem:[#allocation3 + $0x308] sm:$0xff]  ;;  %3990 = vst [vmem:[#allocation54_spill] sm:$0xff] %v3428_v37  ;;  %v3432_v39 = vld [vmem:[#allocation3 + $0x310] sm:$0xff] }
  0xde   : > { %1682 = vmatpush2.msra.mxu1 %v840_v38  ;;  %1068 = vmatprep.mubr.f32.mxu0 %v3410_v52  ;;  %3989 = vst [vmem:[#allocation53_spill] sm:$0xff] %v3426_v36  ;;  %v3430_v38 = vld [vmem:[#allocation3 + $0x300] sm:$0xff]  ;;  %3992 = vst [vmem:[#allocation56_spill] sm:$0xff] %v3432_v39  ;;  %v833_v52 = vld [vmem:[%s2920_s15 + $0x6f8] sm:$0xff] }
  0xdf   : > { %1325 = vmatprep.mubr.f32.mxu1 %v3412_v53  ;;  %1069 = vmatmul.mubr.f32.gmra.mxu0 %v3414_v54  ;;  %3991 = vst [vmem:[#allocation55_spill] sm:$0xff] %v3430_v38  ;;  %v705_v53 = vld [vmem:[%s2920_s15 + $0x2f8] sm:$0xff]  ;;  %v832_v54 = vld [vmem:[%s2920_s15 + $0x6f0] sm:$0xff] }
  0xe0   : > { %1326 = vmatmul.mubr.f32.gmra.mxu1 %v3416_v55  ;;  %1426 = vmatprep.subr.mxu0 %v709_v5  ;;  %v704_v55 = vld [vmem:[%s2920_s15 + $0x2f0] sm:$0xff]  ;;  %v3444_v5 = vld [vmem:[#allocation3 + $0x338] sm:$0xff] }
  0xe1   : > { %1683 = vmatprep.subr.mxu1 %v837_v4  ;;  %1427 = vmatpush2.msra.mxu0 %v708_v7  ;;  %v3442_v4 = vld [vmem:[#allocation3 + $0x328] sm:$0xff]  ;;  %3994 = vst [vmem:[#allocation58_spill] sm:$0xff] %v3444_v5  ;;  %v3448_v7 = vld [vmem:[#allocation3 + $0x330] sm:$0xff] }
  0xe2   : > { %1684 = vmatpush2.msra.mxu1 %v836_v6  ;;  %1074 = vmatprep.mubr.f32.mxu0 %v3426_v36  ;;  %3993 = vst [vmem:[#allocation57_spill] sm:$0xff] %v3442_v4  ;;  %v3446_v6 = vld [vmem:[#allocation3 + $0x320] sm:$0xff]  ;;  %3996 = vst [vmem:[#allocation60_spill] sm:$0xff] %v3448_v7  ;;  %v829_v36 = vld [vmem:[%s2920_s15 + $0x6d8] sm:$0xff] }
  0xe3   : > { %1331 = vmatprep.mubr.f32.mxu1 %v3428_v37  ;;  %1075 = vmatmul.mubr.f32.gmra.mxu0 %v3430_v38  ;;  %3995 = vst [vmem:[#allocation59_spill] sm:$0xff] %v3446_v6  ;;  %v701_v37 = vld [vmem:[%s2920_s15 + $0x2d8] sm:$0xff]  ;;  %v828_v38 = vld [vmem:[%s2920_s15 + $0x6d0] sm:$0xff] }
  0xe4   : > { %1332 = vmatmul.mubr.f32.gmra.mxu1 %v3432_v39  ;;  %1428 = vmatprep.subr.mxu0 %v705_v53  ;;  %v700_v39 = vld [vmem:[%s2920_s15 + $0x2d0] sm:$0xff]  ;;  %v3460_v53 = vld [vmem:[#allocation3 + $0x358] sm:$0xff] }
  0xe5   : > { %1685 = vmatprep.subr.mxu1 %v833_v52  ;;  %1429 = vmatpush2.msra.mxu0 %v704_v55  ;;  %v3458_v52 = vld [vmem:[#allocation3 + $0x348] sm:$0xff]  ;;  %3998 = vst [vmem:[#allocation62_spill] sm:$0xff] %v3460_v53  ;;  %v3464_v55 = vld [vmem:[#allocation3 + $0x350] sm:$0xff] }
  0xe6   : > { %1686 = vmatpush2.msra.mxu1 %v832_v54  ;;  %1080 = vmatprep.mubr.f32.mxu0 %v3442_v4  ;;  %3997 = vst [vmem:[#allocation61_spill] sm:$0xff] %v3458_v52  ;;  %v3462_v54 = vld [vmem:[#allocation3 + $0x340] sm:$0xff]  ;;  %4000 = vst [vmem:[#allocation64_spill] sm:$0xff] %v3464_v55  ;;  %v825_v4 = vld [vmem:[%s2920_s15 + $0x6b8] sm:$0xff] }
  0xe7   : > { %1337 = vmatprep.mubr.f32.mxu1 %v3444_v5  ;;  %1081 = vmatmul.mubr.f32.gmra.mxu0 %v3446_v6  ;;  %3999 = vst [vmem:[#allocation63_spill] sm:$0xff] %v3462_v54  ;;  %v697_v5 = vld [vmem:[%s2920_s15 + $0x2b8] sm:$0xff]  ;;  %v824_v6 = vld [vmem:[%s2920_s15 + $0x6b0] sm:$0xff] }
  0xe8   : > { %1338 = vmatmul.mubr.f32.gmra.mxu1 %v3448_v7  ;;  %1430 = vmatprep.subr.mxu0 %v701_v37  ;;  %v696_v7 = vld [vmem:[%s2920_s15 + $0x2b0] sm:$0xff]  ;;  %v3476_v37 = vld [vmem:[#allocation3 + $0x378] sm:$0xff] }
  0xe9   : > { %1687 = vmatprep.subr.mxu1 %v829_v36  ;;  %1431 = vmatpush2.msra.mxu0 %v700_v39  ;;  %v3474_v36 = vld [vmem:[#allocation3 + $0x368] sm:$0xff]  ;;  %4002 = vst [vmem:[#allocation66_spill] sm:$0xff] %v3476_v37  ;;  %v3480_v39 = vld [vmem:[#allocation3 + $0x370] sm:$0xff] }
  0xea   : > { %1688 = vmatpush2.msra.mxu1 %v828_v38  ;;  %1086 = vmatprep.mubr.f32.mxu0 %v3458_v52  ;;  %4001 = vst [vmem:[#allocation65_spill] sm:$0xff] %v3474_v36  ;;  %v3478_v38 = vld [vmem:[#allocation3 + $0x360] sm:$0xff]  ;;  %4004 = vst [vmem:[#allocation68_spill] sm:$0xff] %v3480_v39  ;;  %v821_v52 = vld [vmem:[%s2920_s15 + $0x698] sm:$0xff] }
  0xeb   : > { %1343 = vmatprep.mubr.f32.mxu1 %v3460_v53  ;;  %1087 = vmatmul.mubr.f32.gmra.mxu0 %v3462_v54  ;;  %4003 = vst [vmem:[#allocation67_spill] sm:$0xff] %v3478_v38  ;;  %v693_v53 = vld [vmem:[%s2920_s15 + $0x298] sm:$0xff]  ;;  %v820_v54 = vld [vmem:[%s2920_s15 + $0x690] sm:$0xff] }
  0xec   : > { %1344 = vmatmul.mubr.f32.gmra.mxu1 %v3464_v55  ;;  %1432 = vmatprep.subr.mxu0 %v697_v5  ;;  %v692_v55 = vld [vmem:[%s2920_s15 + $0x290] sm:$0xff]  ;;  %v3492_v5 = vld [vmem:[#allocation3 + $0x398] sm:$0xff] }
  0xed   : > { %1689 = vmatprep.subr.mxu1 %v825_v4  ;;  %1433 = vmatpush2.msra.mxu0 %v696_v7  ;;  %v3490_v4 = vld [vmem:[#allocation3 + $0x388] sm:$0xff]  ;;  %4006 = vst [vmem:[#allocation70_spill] sm:$0xff] %v3492_v5  ;;  %v3496_v7 = vld [vmem:[#allocation3 + $0x390] sm:$0xff] }
  0xee   : > { %1690 = vmatpush2.msra.mxu1 %v824_v6  ;;  %1092 = vmatprep.mubr.f32.mxu0 %v3474_v36  ;;  %4005 = vst [vmem:[#allocation69_spill] sm:$0xff] %v3490_v4  ;;  %v3494_v6 = vld [vmem:[#allocation3 + $0x380] sm:$0xff]  ;;  %4008 = vst [vmem:[#allocation72_spill] sm:$0xff] %v3496_v7  ;;  %v817_v36 = vld [vmem:[%s2920_s15 + $0x678] sm:$0xff] }
  0xef   : > { %1349 = vmatprep.mubr.f32.mxu1 %v3476_v37  ;;  %1093 = vmatmul.mubr.f32.gmra.mxu0 %v3478_v38  ;;  %4007 = vst [vmem:[#allocation71_spill] sm:$0xff] %v3494_v6  ;;  %v689_v37 = vld [vmem:[%s2920_s15 + $0x278] sm:$0xff]  ;;  %v816_v38 = vld [vmem:[%s2920_s15 + $0x670] sm:$0xff] }
  0xf0   : > { %1350 = vmatmul.mubr.f32.gmra.mxu1 %v3480_v39  ;;  %1434 = vmatprep.subr.mxu0 %v693_v53  ;;  %v688_v39 = vld [vmem:[%s2920_s15 + $0x270] sm:$0xff]  ;;  %v3508_v53 = vld [vmem:[#allocation3 + $0x3b8] sm:$0xff] }
  0xf1   : > { %1691 = vmatprep.subr.mxu1 %v821_v52  ;;  %1435 = vmatpush2.msra.mxu0 %v692_v55  ;;  %v3506_v52 = vld [vmem:[#allocation3 + $0x3a8] sm:$0xff]  ;;  %4010 = vst [vmem:[#allocation74_spill] sm:$0xff] %v3508_v53  ;;  %v3512_v55 = vld [vmem:[#allocation3 + $0x3b0] sm:$0xff] }
  0xf2   : > { %1692 = vmatpush2.msra.mxu1 %v820_v54  ;;  %1098 = vmatprep.mubr.f32.mxu0 %v3490_v4  ;;  %4009 = vst [vmem:[#allocation73_spill] sm:$0xff] %v3506_v52  ;;  %v3510_v54 = vld [vmem:[#allocation3 + $0x3a0] sm:$0xff]  ;;  %4012 = vst [vmem:[#allocation76_spill] sm:$0xff] %v3512_v55  ;;  %v813_v4 = vld [vmem:[%s2920_s15 + $0x658] sm:$0xff] }
  0xf3   : > { %1355 = vmatprep.mubr.f32.mxu1 %v3492_v5  ;;  %1099 = vmatmul.mubr.f32.gmra.mxu0 %v3494_v6  ;;  %4011 = vst [vmem:[#allocation75_spill] sm:$0xff] %v3510_v54  ;;  %v685_v5 = vld [vmem:[%s2920_s15 + $0x258] sm:$0xff]  ;;  %v812_v6 = vld [vmem:[%s2920_s15 + $0x650] sm:$0xff] }
  0xf4   : > { %1356 = vmatmul.mubr.f32.gmra.mxu1 %v3496_v7  ;;  %1436 = vmatprep.subr.mxu0 %v689_v37  ;;  %v684_v7 = vld [vmem:[%s2920_s15 + $0x250] sm:$0xff]  ;;  %v3524_v37 = vld [vmem:[#allocation3 + $0x3d8] sm:$0xff] }
  0xf5   : > { %1693 = vmatprep.subr.mxu1 %v817_v36  ;;  %1437 = vmatpush2.msra.mxu0 %v688_v39  ;;  %v3522_v36 = vld [vmem:[#allocation3 + $0x3c8] sm:$0xff]  ;;  %4014 = vst [vmem:[#allocation78_spill] sm:$0xff] %v3524_v37  ;;  %v3528_v39 = vld [vmem:[#allocation3 + $0x3d0] sm:$0xff] }
  0xf6   : > { %1694 = vmatpush2.msra.mxu1 %v816_v38  ;;  %1104 = vmatprep.mubr.f32.mxu0 %v3506_v52  ;;  %4013 = vst [vmem:[#allocation77_spill] sm:$0xff] %v3522_v36  ;;  %v3526_v38 = vld [vmem:[#allocation3 + $0x3c0] sm:$0xff]  ;;  %4016 = vst [vmem:[#allocation80_spill] sm:$0xff] %v3528_v39  ;;  %v809_v52 = vld [vmem:[%s2920_s15 + $0x638] sm:$0xff] }
  0xf7   : > { %1361 = vmatprep.mubr.f32.mxu1 %v3508_v53  ;;  %1105 = vmatmul.mubr.f32.gmra.mxu0 %v3510_v54  ;;  %4015 = vst [vmem:[#allocation79_spill] sm:$0xff] %v3526_v38  ;;  %v681_v53 = vld [vmem:[%s2920_s15 + $0x238] sm:$0xff]  ;;  %v808_v54 = vld [vmem:[%s2920_s15 + $0x630] sm:$0xff] }
  0xf8   : > { %1362 = vmatmul.mubr.f32.gmra.mxu1 %v3512_v55  ;;  %1438 = vmatprep.subr.mxu0 %v685_v5  ;;  %v680_v55 = vld [vmem:[%s2920_s15 + $0x230] sm:$0xff]  ;;  %v3540_v5 = vld [vmem:[#allocation3 + $0x3f8] sm:$0xff] }
  0xf9   : > { %1695 = vmatprep.subr.mxu1 %v813_v4  ;;  %1439 = vmatpush2.msra.mxu0 %v684_v7  ;;  %v3538_v4 = vld [vmem:[#allocation3 + $0x3e8] sm:$0xff]  ;;  %v3544_v7 = vld [vmem:[#allocation3 + $0x3f0] sm:$0xff] }
  0xfa   : > { %1696 = vmatpush2.msra.mxu1 %v812_v6  ;;  %1110 = vmatprep.mubr.f32.mxu0 %v3522_v36  ;;  %v3542_v6 = vld [vmem:[#allocation3 + $0x3e0] sm:$0xff]  ;;  %v805_v36 = vld [vmem:[%s2920_s15 + $0x618] sm:$0xff] }
  0xfb   : > { %1367 = vmatprep.mubr.f32.mxu1 %v3524_v37  ;;  %1111 = vmatmul.mubr.f32.gmra.mxu0 %v3526_v38  ;;  %v677_v37 = vld [vmem:[%s2920_s15 + $0x218] sm:$0xff]  ;;  %v676_v38 = vld [vmem:[%s2920_s15 + $0x210] sm:$0xff] }
  0xfc   : > { %1368 = vmatmul.mubr.f32.gmra.mxu1 %v3528_v39  ;;  %1440 = vmatprep.subr.mxu0 %v681_v53  ;;  %v804_v39 = vld [vmem:[%s2920_s15 + $0x610] sm:$0xff]  ;;  %v2632_v53 = vld [vmem:[#allocation3 + $0x18] sm:$0xff] }
  0xfd   : > { %1697 = vmatprep.subr.mxu1 %v809_v52  ;;  %1441 = vmatpush2.msra.mxu0 %v680_v55  ;;  %v2631_v52 = vld [vmem:[#allocation3 + $0x8] sm:$0xff]  ;;  %v2634_v55 = vld [vmem:[#allocation3 + $0x10] sm:$0xff] }
  0xfe   : > { %1698 = vmatpush2.msra.mxu1 %v808_v54  ;;  %1116 = vmatprep.mubr.f32.mxu0 %v3538_v4  ;;  %v2633_v54 = vld [vmem:[#allocation3] sm:$0xff] }
  0xff   : > { %1373 = vmatprep.mubr.f32.mxu1 %v3540_v5  ;;  %1117 = vmatmul.mubr.f32.gmra.mxu0 %v3542_v6 }
 0x100   : > { %1374 = vmatmul.mubr.f32.gmra.mxu1 %v3544_v7  ;;  %1442 = vmatprep.subr.mxu0 %v677_v37  ;;  %v4044_v37 = vld [vmem:[#allocation40_spill] sm:$0xff] }
 0x101   : > { %1699 = vmatprep.subr.mxu1 %v805_v36  ;;  %1443 = vmatpush2.msra.mxu0 %v676_v38  ;;  %v4043_v36 = vld [vmem:[#allocation39_spill] sm:$0xff] }
 0x102   : > { %1700 = vmatpush2.msra.mxu1 %v804_v39  ;;  %1444 = vmatprep.mubr.f32.mxu0 %v2631_v52  ;;  %v4045_v39 = vld [vmem:[#allocation41_spill] sm:$0xff]  ;;  %v4046_v52 = vld [vmem:[#allocation42_spill] sm:$0xff] }
 0x103   : > { %1701 = vmatprep.mubr.f32.mxu1 %v2632_v53  ;;  %1445 = vmatmul.mubr.f32.vlgmr.msra.gmra.mxu0 %v2633_v54 }
 0x104   : > { %1702 = vmatmul.mubr.f32.vlgmr.msra.gmra.mxu1 %v2634_v55  ;;  %1450 = vmatprep.mubr.f32.mxu0 %v3058_v8  ;;  %v4017_v8 = vld [vmem:[#allocation13_spill] sm:$0xff] }
 0x105   : > { %1707 = vmatprep.mubr.f32.mxu1 %v3060_v9  ;;  %v4018_v9 = vld [vmem:[#allocation14_spill] sm:$0xff] }
 0x107   : > { %1451 = vmatmul.mubr.f32.gmra.mxu0 %v3062_v10  ;;  %v4019_v10 = vld [vmem:[#allocation15_spill] sm:$0xff] }
 0x108   : > { %1708 = vmatmul.mubr.f32.gmra.mxu1 %v3064_v11  ;;  %1456 = vmatprep.mubr.f32.mxu0 %v3074_v16  ;;  %v4020_v11 = vld [vmem:[#allocation16_spill] sm:$0xff]  ;;  %v4021_v16 = vld [vmem:[#allocation17_spill] sm:$0xff] }
 0x109   : > { %1713 = vmatprep.mubr.f32.mxu1 %v3076_v17  ;;  %v4022_v17 = vld [vmem:[#allocation18_spill] sm:$0xff] }
 0x10b   : > { %1457 = vmatmul.mubr.f32.gmra.mxu0 %v3078_v18  ;;  %v4023_v18 = vld [vmem:[#allocation19_spill] sm:$0xff] }
 0x10c   : > { %1714 = vmatmul.mubr.f32.gmra.mxu1 %v3080_v19  ;;  %1462 = vmatprep.mubr.f32.mxu0 %v3090_v24  ;;  %v4024_v19 = vld [vmem:[#allocation20_spill] sm:$0xff]  ;;  %v4025_v24 = vld [vmem:[#allocation21_spill] sm:$0xff] }
 0x10d   : > { %1719 = vmatprep.mubr.f32.mxu1 %v3092_v25  ;;  %v4026_v25 = vld [vmem:[#allocation22_spill] sm:$0xff] }
 0x10f   : > { %1463 = vmatmul.mubr.f32.gmra.mxu0 %v3094_v26 }
 0x110   : > { %1720 = vmatmul.mubr.f32.gmra.mxu1 %v3096_v27  ;;  %1468 = vmatprep.mubr.f32.mxu0 %v3106_v32  ;;  %v4027_v32 = vld [vmem:[#allocation23_spill] sm:$0xff] }
 0x111   : > { %1725 = vmatprep.mubr.f32.mxu1 %v3108_v33  ;;  %v4028_v33 = vld [vmem:[#allocation24_spill] sm:$0xff] }
 0x113   : > { %1469 = vmatmul.mubr.f32.gmra.mxu0 %v3110_v34 }
 0x114   : > { %1726 = vmatmul.mubr.f32.gmra.mxu1 %v3112_v35  ;;  %1474 = vmatprep.mubr.f32.mxu0 %v3122_v40  ;;  %v4029_v35 = vld [vmem:[#allocation25_spill] sm:$0xff]  ;;  %v4030_v40 = vld [vmem:[#allocation26_spill] sm:$0xff] }
 0x115   : > { %1731 = vmatprep.mubr.f32.mxu1 %v3124_v41 }
 0x117   : > { %1475 = vmatmul.mubr.f32.gmra.mxu0 %v3126_v42 }
 0x118   : > { %1732 = vmatmul.mubr.f32.gmra.mxu1 %v3128_v43  ;;  %1480 = vmatprep.mubr.f32.mxu0 %v3138_v48 }
 0x119   : > { %1737 = vmatprep.mubr.f32.mxu1 %v3140_v49 }
 0x11b   : > { %1481 = vmatmul.mubr.f32.gmra.mxu0 %v3142_v50  ;;  %v4031_v50 = vld [vmem:[#allocation27_spill] sm:$0xff] }
 0x11c   : > { %1738 = vmatmul.mubr.f32.gmra.mxu1 %v3144_v51  ;;  %1486 = vmatprep.mubr.f32.mxu0 %v3154_v56  ;;  %v4032_v51 = vld [vmem:[#allocation28_spill] sm:$0xff] }
 0x11d   : > { %1743 = vmatprep.mubr.f32.mxu1 %v3156_v57  ;;  %v4033_v57 = vld [vmem:[#allocation29_spill] sm:$0xff] }
 0x11f   : > { %1487 = vmatmul.mubr.f32.gmra.mxu0 %v3158_v58  ;;  %v4034_v58 = vld [vmem:[#allocation30_spill] sm:$0xff] }
 0x120   : > { %1744 = vmatmul.mubr.f32.gmra.mxu1 %v3160_v59  ;;  %1492 = vmatprep.mubr.f32.mxu0 %v3170_v0 }
 0x121   : > { %1749 = vmatprep.mubr.f32.mxu1 %v3172_v1 }
 0x123   : > { %1493 = vmatmul.mubr.f32.gmra.mxu0 %v3174_v2 }
 0x124   : > { %1750 = vmatmul.mubr.f32.gmra.mxu1 %v3176_v3  ;;  %1498 = vmatprep.mubr.f32.mxu0 %v3186_v12  ;;  %v4035_v12 = vld [vmem:[#allocation31_spill] sm:$0xff] }
 0x125   : > { %1755 = vmatprep.mubr.f32.mxu1 %v3188_v13  ;;  %v4036_v13 = vld [vmem:[#allocation32_spill] sm:$0xff] }
 0x127   : > { %1499 = vmatmul.mubr.f32.gmra.mxu0 %v3190_v14 }
 0x128   : > { %1756 = vmatmul.mubr.f32.gmra.mxu1 %v3192_v15  ;;  %1504 = vmatprep.mubr.f32.mxu0 %v3202_v28  ;;  %v4037_v15 = vld [vmem:[#allocation33_spill] sm:$0xff]  ;;  %v4038_v28 = vld [vmem:[#allocation34_spill] sm:$0xff] }
 0x129   : > { %1761 = vmatprep.mubr.f32.mxu1 %v3204_v29 }
 0x12b   : > { %1505 = vmatmul.mubr.f32.gmra.mxu0 %v3206_v30 }
 0x12c   : > { %1762 = vmatmul.mubr.f32.gmra.mxu1 %v3208_v31  ;;  %1510 = vmatprep.mubr.f32.mxu0 %v3218_v44 }
 0x12d   : > { %1767 = vmatprep.mubr.f32.mxu1 %v3220_v45 }
 0x12f   : > { %1511 = vmatmul.mubr.f32.gmra.mxu0 %v3222_v46  ;;  %v4039_v46 = vld [vmem:[#allocation35_spill] sm:$0xff] }
 0x130   : > { %1768 = vmatmul.mubr.f32.gmra.mxu1 %v3224_v47  ;;  %1516 = vmatprep.mubr.f32.mxu0 %v3234_v60  ;;  %v4040_v47 = vld [vmem:[#allocation36_spill] sm:$0xff] }
 0x131   : > { %1773 = vmatprep.mubr.f32.mxu1 %v3236_v61  ;;  %v4041_v61 = vld [vmem:[#allocation37_spill] sm:$0xff] }
 0x133   : > { %1517 = vmatmul.mubr.f32.gmra.mxu0 %v3238_v62  ;;  %v4042_v62 = vld [vmem:[#allocation38_spill] sm:$0xff] }
 0x134   : > { %1774 = vmatmul.mubr.f32.gmra.mxu1 %v3240_v63  ;;  %1522 = vmatprep.mubr.f32.mxu0 %v3250_v20 }
 0x135   : > { %1779 = vmatprep.mubr.f32.mxu1 %v3252_v21 }
 0x137   : > { %1523 = vmatmul.mubr.f32.gmra.mxu0 %v3254_v22 }
 0x138   : > { %1780 = vmatmul.mubr.f32.gmra.mxu1 %v3256_v23  ;;  %1528 = vmatprep.mubr.f32.mxu0 %v4017_v8 }
 0x139   : > { %1785 = vmatprep.mubr.f32.mxu1 %v4018_v9 }
 0x13b   : > { %1529 = vmatmul.mubr.f32.gmra.mxu0 %v4019_v10  ;;  %v4047_v10 = vld [vmem:[#allocation43_spill] sm:$0xff] }
 0x13c   : > { %1786 = vmatmul.mubr.f32.gmra.mxu1 %v4020_v11  ;;  %1534 = vmatprep.mubr.f32.mxu0 %v4021_v16  ;;  %v4048_v11 = vld [vmem:[#allocation44_spill] sm:$0xff] }
 0x13d   : > { %1791 = vmatprep.mubr.f32.mxu1 %v4022_v17  ;;  %v4049_v17 = vld [vmem:[#allocation45_spill] sm:$0xff] }
 0x13f   : > { %1535 = vmatmul.mubr.f32.gmra.mxu0 %v4023_v18  ;;  %v4050_v18 = vld [vmem:[#allocation46_spill] sm:$0xff] }
 0x140   : > { %1792 = vmatmul.mubr.f32.gmra.mxu1 %v4024_v19  ;;  %1540 = vmatprep.mubr.f32.mxu0 %v4025_v24 }
 0x141   : > { %1797 = vmatprep.mubr.f32.mxu1 %v4026_v25 }
 0x143   : > { %v932_v26 = vpop.f32.mrf.mxu0  ;;  %1541 = vmatmul.mubr.f32.gmra.mxu0 %v4027_v32  ;;  %v4051_v32 = vld [vmem:[#allocation47_spill] sm:$0xff] }
 0x144   : > { %v1189_v27 = vpop.f32.mrf.mxu1  ;;  %1798 = vmatmul.mubr.f32.gmra.mxu1 %v4028_v33  ;;  %1546 = vmatprep.mubr.f32.mxu0 %v4029_v35  ;;  %v4052_v33 = vld [vmem:[#allocation48_spill] sm:$0xff]  ;;  %v4053_v35 = vld [vmem:[#allocation49_spill] sm:$0xff] }
 0x145   : > { %v1190_v34 = vadd.f32 %v1189_v27, %v932_v26  ;;  %1803 = vmatprep.mubr.f32.mxu1 %v4030_v40  ;;  %v934_v41 = vpop.f32.mrf.mxu0  ;;  %v4054_v40 = vld [vmem:[#allocation50_spill] sm:$0xff] }
 0x146   : > { %v1191_v42 = vpop.f32.mrf.mxu1 }
 0x147   : > { %2281 = vst [vmem:[%s3621_s19] sm:$0xff] %v1190_v34  ;;  %v1192_v43 = vadd.f32 %v1191_v42, %v934_v41  ;;  %v938_v48 = vpop.f32.mrf.mxu0  ;;  %1547 = vmatmul.mubr.f32.gmra.mxu0 %v4031_v50  ;;  %v4055_v50 = vld [vmem:[#allocation51_spill] sm:$0xff] }
 0x148   : > { %v1195_v49 = vpop.f32.mrf.mxu1  ;;  %1804 = vmatmul.mubr.f32.gmra.mxu1 %v4032_v51  ;;  %1552 = vmatprep.mubr.f32.mxu0 %v4033_v57  ;;  %v4056_v51 = vld [vmem:[#allocation52_spill] sm:$0xff]  ;;  %v4057_v57 = vld [vmem:[#allocation53_spill] sm:$0xff] }
 0x149   : > { %2282 = vst [vmem:[%s3621_s19 + $0x8] sm:$0xff] %v1192_v43  ;;  %v1196_v56 = vadd.f32 %v1195_v49, %v938_v48  ;;  %1809 = vmatprep.mubr.f32.mxu1 %v4034_v58  ;;  %v940_v59 = vpop.f32.mrf.mxu0  ;;  %v4058_v58 = vld [vmem:[#allocation54_spill] sm:$0xff] }
 0x14a   : > { %v1197_v0 = vpop.f32.mrf.mxu1 }
 0x14b   : > { %2285 = vst [vmem:[%s3621_s19 + $0x20] sm:$0xff] %v1196_v56  ;;  %v1198_v1 = vadd.f32 %v1197_v0, %v940_v59  ;;  %v944_v2 = vpop.f32.mrf.mxu0  ;;  %1553 = vmatmul.mubr.f32.gmra.mxu0 %v4035_v12  ;;  %v4059_v12 = vld [vmem:[#allocation55_spill] sm:$0xff] }
 0x14c   : > { %v1201_v3 = vpop.f32.mrf.mxu1  ;;  %1810 = vmatmul.mubr.f32.gmra.mxu1 %v4036_v13  ;;  %1558 = vmatprep.mubr.f32.mxu0 %v4037_v15  ;;  %v4060_v13 = vld [vmem:[#allocation56_spill] sm:$0xff]  ;;  %v4061_v15 = vld [vmem:[#allocation57_spill] sm:$0xff] }
 0x14d   : > { %2286 = vst [vmem:[%s3621_s19 + $0x28] sm:$0xff] %v1198_v1  ;;  %v1202_v14 = vadd.f32 %v1201_v3, %v944_v2  ;;  %1815 = vmatprep.mubr.f32.mxu1 %v4038_v28  ;;  %v946_v29 = vpop.f32.mrf.mxu0  ;;  %v4062_v28 = vld [vmem:[#allocation58_spill] sm:$0xff] }
 0x14e   : > { %v1203_v30 = vpop.f32.mrf.mxu1 }
 0x14f   : > { %2289 = vst [vmem:[%s3621_s19 + $0x40] sm:$0xff] %v1202_v14  ;;  %v1204_v31 = vadd.f32 %v1203_v30, %v946_v29  ;;  %v950_v44 = vpop.f32.mrf.mxu0  ;;  %1559 = vmatmul.mubr.f32.gmra.mxu0 %v4039_v46  ;;  %v4063_v46 = vld [vmem:[#allocation59_spill] sm:$0xff] }
 0x150   : > { %v1207_v45 = vpop.f32.mrf.mxu1  ;;  %1816 = vmatmul.mubr.f32.gmra.mxu1 %v4040_v47  ;;  %1564 = vmatprep.mubr.f32.mxu0 %v4041_v61  ;;  %v4064_v47 = vld [vmem:[#allocation60_spill] sm:$0xff]  ;;  %v4065_v61 = vld [vmem:[#allocation61_spill] sm:$0xff] }
 0x151   : > { %2290 = vst [vmem:[%s3621_s19 + $0x48] sm:$0xff] %v1204_v31  ;;  %v1208_v60 = vadd.f32 %v1207_v45, %v950_v44  ;;  %1821 = vmatprep.mubr.f32.mxu1 %v4042_v62  ;;  %v952_v63 = vpop.f32.mrf.mxu0  ;;  %v4066_v62 = vld [vmem:[#allocation62_spill] sm:$0xff] }
 0x152   : > { %v1209_v20 = vpop.f32.mrf.mxu1 }
 0x153   : > { %2293 = vst [vmem:[%s3621_s19 + $0x60] sm:$0xff] %v1208_v60  ;;  %v1210_v21 = vadd.f32 %v1209_v20, %v952_v63  ;;  %v956_v22 = vpop.f32.mrf.mxu0  ;;  %1565 = vmatmul.mubr.f32.gmra.mxu0 %v4043_v36  ;;  %v4067_v36 = vld [vmem:[#allocation63_spill] sm:$0xff] }
 0x154   : > { %v1213_v23 = vpop.f32.mrf.mxu1  ;;  %1822 = vmatmul.mubr.f32.gmra.mxu1 %v4044_v37  ;;  %1570 = vmatprep.mubr.f32.mxu0 %v4045_v39  ;;  %v4068_v37 = vld [vmem:[#allocation64_spill] sm:$0xff]  ;;  %v4069_v39 = vld [vmem:[#allocation65_spill] sm:$0xff] }
 0x155   : > { %2294 = vst [vmem:[%s3621_s19 + $0x68] sm:$0xff] %v1210_v21  ;;  %v1214_v38 = vadd.f32 %v1213_v23, %v956_v22  ;;  %1827 = vmatprep.mubr.f32.mxu1 %v4046_v52  ;;  %v958_v53 = vpop.f32.mrf.mxu0  ;;  %v4070_v52 = vld [vmem:[#allocation66_spill] sm:$0xff] }
 0x156   : > { %v1215_v54 = vpop.f32.mrf.mxu1 }
 0x157   : > { %2297 = vst [vmem:[%s3621_s19 + $0x80] sm:$0xff] %v1214_v38  ;;  %v1216_v55 = vadd.f32 %v1215_v54, %v958_v53  ;;  %v962_v8 = vpop.f32.mrf.mxu0  ;;  %1571 = vmatmul.mubr.f32.gmra.mxu0 %v4047_v10  ;;  %v4071_v10 = vld [vmem:[#allocation67_spill] sm:$0xff] }
 0x158   : > { %v1219_v9 = vpop.f32.mrf.mxu1  ;;  %1828 = vmatmul.mubr.f32.gmra.mxu1 %v4048_v11  ;;  %1576 = vmatprep.mubr.f32.mxu0 %v4049_v17  ;;  %v4072_v11 = vld [vmem:[#allocation68_spill] sm:$0xff]  ;;  %v4073_v17 = vld [vmem:[#allocation69_spill] sm:$0xff] }
 0x159   : > { %2298 = vst [vmem:[%s3621_s19 + $0x88] sm:$0xff] %v1216_v55  ;;  %v1220_v16 = vadd.f32 %v1219_v9, %v962_v8  ;;  %1833 = vmatprep.mubr.f32.mxu1 %v4050_v18  ;;  %v964_v19 = vpop.f32.mrf.mxu0  ;;  %v4074_v18 = vld [vmem:[#allocation70_spill] sm:$0xff] }
 0x15a   : > { %v1221_v24 = vpop.f32.mrf.mxu1 }
 0x15b   : > { %2301 = vst [vmem:[%s3621_s19 + $0xa0] sm:$0xff] %v1220_v16  ;;  %v1222_v25 = vadd.f32 %v1221_v24, %v964_v19  ;;  %v968_v26 = vpop.f32.mrf.mxu0  ;;  %1577 = vmatmul.mubr.f32.gmra.mxu0 %v4051_v32  ;;  %v4075_v32 = vld [vmem:[#allocation71_spill] sm:$0xff] }
 0x15c   : > { %v1225_v27 = vpop.f32.mrf.mxu1  ;;  %1834 = vmatmul.mubr.f32.gmra.mxu1 %v4052_v33  ;;  %1582 = vmatprep.mubr.f32.mxu0 %v4053_v35  ;;  %v4076_v33 = vld [vmem:[#allocation72_spill] sm:$0xff]  ;;  %v4077_v35 = vld [vmem:[#allocation73_spill] sm:$0xff] }
 0x15d   : > { %2302 = vst [vmem:[%s3621_s19 + $0xa8] sm:$0xff] %v1222_v25  ;;  %v1226_v34 = vadd.f32 %v1225_v27, %v968_v26  ;;  %1839 = vmatprep.mubr.f32.mxu1 %v4054_v40  ;;  %v970_v41 = vpop.f32.mrf.mxu0  ;;  %v4078_v40 = vld [vmem:[#allocation74_spill] sm:$0xff] }
 0x15e   : > { %v1227_v42 = vpop.f32.mrf.mxu1 }
 0x15f   : > { %2305 = vst [vmem:[%s3621_s19 + $0xc0] sm:$0xff] %v1226_v34  ;;  %v1228_v43 = vadd.f32 %v1227_v42, %v970_v41  ;;  %v974_v48 = vpop.f32.mrf.mxu0  ;;  %1583 = vmatmul.mubr.f32.gmra.mxu0 %v4055_v50  ;;  %v4079_v50 = vld [vmem:[#allocation75_spill] sm:$0xff] }
 0x160   : > { %v1231_v49 = vpop.f32.mrf.mxu1  ;;  %1840 = vmatmul.mubr.f32.gmra.mxu1 %v4056_v51  ;;  %1588 = vmatprep.mubr.f32.mxu0 %v4057_v57  ;;  %v4080_v51 = vld [vmem:[#allocation76_spill] sm:$0xff]  ;;  %v4081_v57 = vld [vmem:[#allocation77_spill] sm:$0xff] }
 0x161   : > { %2306 = vst [vmem:[%s3621_s19 + $0xc8] sm:$0xff] %v1228_v43  ;;  %v1232_v56 = vadd.f32 %v1231_v49, %v974_v48  ;;  %1845 = vmatprep.mubr.f32.mxu1 %v4058_v58  ;;  %v976_v59 = vpop.f32.mrf.mxu0  ;;  %v4082_v58 = vld [vmem:[#allocation78_spill] sm:$0xff] }
 0x162   : > { %v1233_v0 = vpop.f32.mrf.mxu1 }
 0x163   : > { %2309 = vst [vmem:[%s3621_s19 + $0xe0] sm:$0xff] %v1232_v56  ;;  %v1234_v1 = vadd.f32 %v1233_v0, %v976_v59  ;;  %v980_v2 = vpop.f32.mrf.mxu0  ;;  %1589 = vmatmul.mubr.f32.gmra.mxu0 %v4059_v12  ;;  %v4083_v12 = vld [vmem:[#allocation79_spill] sm:$0xff] }
 0x164   : > { %v1237_v3 = vpop.f32.mrf.mxu1  ;;  %1846 = vmatmul.mubr.f32.gmra.mxu1 %v4060_v13  ;;  %1594 = vmatprep.mubr.f32.mxu0 %v4061_v15  ;;  %v4084_v13 = vld [vmem:[#allocation80_spill] sm:$0xff] }
 0x165   : > { %2310 = vst [vmem:[%s3621_s19 + $0xe8] sm:$0xff] %v1234_v1  ;;  %v1238_v14 = vadd.f32 %v1237_v3, %v980_v2  ;;  %1851 = vmatprep.mubr.f32.mxu1 %v4062_v28  ;;  %v982_v29 = vpop.f32.mrf.mxu0 }
 0x166   : > { %v1239_v30 = vpop.f32.mrf.mxu1 }
 0x167   : > { %2313 = vst [vmem:[%s3621_s19 + $0x100] sm:$0xff] %v1238_v14  ;;  %v1240_v31 = vadd.f32 %v1239_v30, %v982_v29  ;;  %v986_v44 = vpop.f32.mrf.mxu0  ;;  %1595 = vmatmul.mubr.f32.gmra.mxu0 %v4063_v46 }
 0x168   : > { %v1243_v45 = vpop.f32.mrf.mxu1  ;;  %1852 = vmatmul.mubr.f32.gmra.mxu1 %v4064_v47  ;;  %1600 = vmatprep.mubr.f32.mxu0 %v4065_v61 }
 0x169   : > { %2314 = vst [vmem:[%s3621_s19 + $0x108] sm:$0xff] %v1240_v31  ;;  %v1244_v60 = vadd.f32 %v1243_v45, %v986_v44  ;;  %1857 = vmatprep.mubr.f32.mxu1 %v4066_v62  ;;  %v988_v63 = vpop.f32.mrf.mxu0 }
 0x16a   : > { %v1245_v20 = vpop.f32.mrf.mxu1 }
 0x16b   : > { %2317 = vst [vmem:[%s3621_s19 + $0x120] sm:$0xff] %v1244_v60  ;;  %v1246_v21 = vadd.f32 %v1245_v20, %v988_v63  ;;  %v992_v22 = vpop.f32.mrf.mxu0  ;;  %1601 = vmatmul.mubr.f32.gmra.mxu0 %v4067_v36 }
 0x16c   : > { %v1249_v23 = vpop.f32.mrf.mxu1  ;;  %1858 = vmatmul.mubr.f32.gmra.mxu1 %v4068_v37  ;;  %1606 = vmatprep.mubr.f32.mxu0 %v4069_v39 }
 0x16d   : > { %2318 = vst [vmem:[%s3621_s19 + $0x128] sm:$0xff] %v1246_v21  ;;  %v1250_v38 = vadd.f32 %v1249_v23, %v992_v22  ;;  %1863 = vmatprep.mubr.f32.mxu1 %v4070_v52  ;;  %v994_v53 = vpop.f32.mrf.mxu0 }
 0x16e   : > { %v1251_v54 = vpop.f32.mrf.mxu1 }
 0x16f   : > { %2321 = vst [vmem:[%s3621_s19 + $0x140] sm:$0xff] %v1250_v38  ;;  %v1252_v55 = vadd.f32 %v1251_v54, %v994_v53  ;;  %v998_v8 = vpop.f32.mrf.mxu0  ;;  %1607 = vmatmul.mubr.f32.gmra.mxu0 %v4071_v10 }
 0x170   : > { %v1255_v9 = vpop.f32.mrf.mxu1  ;;  %1864 = vmatmul.mubr.f32.gmra.mxu1 %v4072_v11  ;;  %1612 = vmatprep.mubr.f32.mxu0 %v4073_v17 }
 0x171   : > { %2322 = vst [vmem:[%s3621_s19 + $0x148] sm:$0xff] %v1252_v55  ;;  %v1256_v16 = vadd.f32 %v1255_v9, %v998_v8  ;;  %1869 = vmatprep.mubr.f32.mxu1 %v4074_v18  ;;  %v1000_v19 = vpop.f32.mrf.mxu0 }
 0x172   : > { %v1257_v24 = vpop.f32.mrf.mxu1 }
 0x173   : > { %2325 = vst [vmem:[%s3621_s19 + $0x160] sm:$0xff] %v1256_v16  ;;  %v1258_v25 = vadd.f32 %v1257_v24, %v1000_v19  ;;  %v1004_v26 = vpop.f32.mrf.mxu0  ;;  %1613 = vmatmul.mubr.f32.gmra.mxu0 %v4075_v32 }
 0x174   : > { %v1261_v27 = vpop.f32.mrf.mxu1  ;;  %1870 = vmatmul.mubr.f32.gmra.mxu1 %v4076_v33  ;;  %1618 = vmatprep.mubr.f32.mxu0 %v4077_v35 }
 0x175   : > { %2326 = vst [vmem:[%s3621_s19 + $0x168] sm:$0xff] %v1258_v25  ;;  %v1262_v34 = vadd.f32 %v1261_v27, %v1004_v26  ;;  %1875 = vmatprep.mubr.f32.mxu1 %v4078_v40  ;;  %v1006_v41 = vpop.f32.mrf.mxu0 }
 0x176   : > { %v1263_v42 = vpop.f32.mrf.mxu1 }
 0x177   : > { %2329 = vst [vmem:[%s3621_s19 + $0x180] sm:$0xff] %v1262_v34  ;;  %v1264_v43 = vadd.f32 %v1263_v42, %v1006_v41  ;;  %v1010_v48 = vpop.f32.mrf.mxu0  ;;  %1619 = vmatmul.mubr.f32.gmra.mxu0 %v4079_v50 }
 0x178   : > { %v1267_v49 = vpop.f32.mrf.mxu1  ;;  %1876 = vmatmul.mubr.f32.gmra.mxu1 %v4080_v51  ;;  %1624 = vmatprep.mubr.f32.mxu0 %v4081_v57 }
 0x179   : > { %2330 = vst [vmem:[%s3621_s19 + $0x188] sm:$0xff] %v1264_v43  ;;  %v1268_v56 = vadd.f32 %v1267_v49, %v1010_v48  ;;  %1881 = vmatprep.mubr.f32.mxu1 %v4082_v58  ;;  %v1012_v59 = vpop.f32.mrf.mxu0 }
 0x17a   : > { %v1269_v0 = vpop.f32.mrf.mxu1 }
 0x17b   : > { %2333 = vst [vmem:[%s3621_s19 + $0x1a0] sm:$0xff] %v1268_v56  ;;  %v1270_v1 = vadd.f32 %v1269_v0, %v1012_v59  ;;  %v1016_v2 = vpop.f32.mrf.mxu0  ;;  %1625 = vmatmul.mubr.f32.gmra.mxu0 %v4083_v12 }
 0x17c   : > { %v1273_v3 = vpop.f32.mrf.mxu1  ;;  %1882 = vmatmul.mubr.f32.gmra.mxu1 %v4084_v13  ;;  %1630 = vmatprep.mubr.f32.mxu0 %v3538_v4 }
 0x17d   : > { %2334 = vst [vmem:[%s3621_s19 + $0x1a8] sm:$0xff] %v1270_v1  ;;  %v1274_v14 = vadd.f32 %v1273_v3, %v1016_v2  ;;  %1887 = vmatprep.mubr.f32.mxu1 %v3540_v5  ;;  %v1018_v15 = vpop.f32.mrf.mxu0 }
 0x17e   : > { %v1275_v28 = vpop.f32.mrf.mxu1 }
 0x17f   : > { %2337 = vst [vmem:[%s3621_s19 + $0x1c0] sm:$0xff] %v1274_v14  ;;  %v1276_v29 = vadd.f32 %v1275_v28, %v1018_v15  ;;  %v1022_v30 = vpop.f32.mrf.mxu0  ;;  %1631 = vmatmul.mubr.f32.gmra.mxu0 %v3542_v6 }
 0x180   : > { %v1279_v31 = vpop.f32.mrf.mxu1  ;;  %1888 = vmatmul.mubr.f32.gmra.mxu1 %v3544_v7 }
 0x181   : > { %2338 = vst [vmem:[%s3621_s19 + $0x1c8] sm:$0xff] %v1276_v29  ;;  %v1280_v44 = vadd.f32 %v1279_v31, %v1022_v30  ;;  %v1024_v45 = vpop.f32.mrf.mxu0 }
 0x182   : > { %v1281_v46 = vpop.f32.mrf.mxu1 }
 0x183   : > { %2341 = vst [vmem:[%s3621_s19 + $0x1e0] sm:$0xff] %v1280_v44  ;;  %v1282_v4 = vadd.f32 %v1281_v46, %v1024_v45  ;;  %v1028_v5 = vpop.f32.mrf.mxu0 }
 0x184   : > { %v1285_v47 = vpop.f32.mrf.mxu1 }
 0x185   : > { %2342 = vst [vmem:[%s3621_s19 + $0x1e8] sm:$0xff] %v1282_v4  ;;  %v1286_v60 = vadd.f32 %v1285_v47, %v1028_v5  ;;  %v1030_v61 = vpop.f32.mrf.mxu0 }
 0x186   : > { %v1287_v62 = vpop.f32.mrf.mxu1 }
 0x187   : > { %2345 = vst [vmem:[%s3621_s19 + $0x200] sm:$0xff] %v1286_v60  ;;  %v1288_v6 = vadd.f32 %v1287_v62, %v1030_v61  ;;  %v1034_v63 = vpop.f32.mrf.mxu0 }
 0x188   : > { %v1291_v7 = vpop.f32.mrf.mxu1 }
 0x189   : > { %2346 = vst [vmem:[%s3621_s19 + $0x208] sm:$0xff] %v1288_v6  ;;  %v1292_v20 = vadd.f32 %v1291_v7, %v1034_v63  ;;  %v1036_v21 = vpop.f32.mrf.mxu0 }
 0x18a   : > { %v1293_v22 = vpop.f32.mrf.mxu1 }
 0x18b   : > { %2349 = vst [vmem:[%s3621_s19 + $0x220] sm:$0xff] %v1292_v20  ;;  %v1294_v23 = vadd.f32 %v1293_v22, %v1036_v21  ;;  %v1040_v36 = vpop.f32.mrf.mxu0 }
 0x18c   : > { %v1297_v37 = vpop.f32.mrf.mxu1 }
 0x18d   : > { %2350 = vst [vmem:[%s3621_s19 + $0x228] sm:$0xff] %v1294_v23  ;;  %v1298_v38 = vadd.f32 %v1297_v37, %v1040_v36  ;;  %v1042_v39 = vpop.f32.mrf.mxu0 }
 0x18e   : > { %v1299_v52 = vpop.f32.mrf.mxu1 }
 0x18f   : > { %2353 = vst [vmem:[%s3621_s19 + $0x240] sm:$0xff] %v1298_v38  ;;  %v1300_v53 = vadd.f32 %v1299_v52, %v1042_v39  ;;  %v1046_v54 = vpop.f32.mrf.mxu0 }
 0x190   : > { %v1303_v55 = vpop.f32.mrf.mxu1 }
 0x191   : > { %2354 = vst [vmem:[%s3621_s19 + $0x248] sm:$0xff] %v1300_v53  ;;  %v1304_v8 = vadd.f32 %v1303_v55, %v1046_v54  ;;  %v1048_v9 = vpop.f32.mrf.mxu0 }
 0x192   : > { %v1305_v10 = vpop.f32.mrf.mxu1 }
 0x193   : > { %2357 = vst [vmem:[%s3621_s19 + $0x260] sm:$0xff] %v1304_v8  ;;  %v1306_v11 = vadd.f32 %v1305_v10, %v1048_v9  ;;  %v1052_v16 = vpop.f32.mrf.mxu0 }
 0x194   : > { %v1309_v17 = vpop.f32.mrf.mxu1 }
 0x195   : > { %2358 = vst [vmem:[%s3621_s19 + $0x268] sm:$0xff] %v1306_v11  ;;  %v1310_v18 = vadd.f32 %v1309_v17, %v1052_v16  ;;  %v1054_v19 = vpop.f32.mrf.mxu0 }
 0x196   : > { %v1311_v24 = vpop.f32.mrf.mxu1 }
 0x197   : > { %2361 = vst [vmem:[%s3621_s19 + $0x280] sm:$0xff] %v1310_v18  ;;  %v1312_v25 = vadd.f32 %v1311_v24, %v1054_v19  ;;  %v1058_v26 = vpop.f32.mrf.mxu0 }
 0x198   : > { %v1315_v27 = vpop.f32.mrf.mxu1 }
 0x199   : > { %2362 = vst [vmem:[%s3621_s19 + $0x288] sm:$0xff] %v1312_v25  ;;  %v1316_v32 = vadd.f32 %v1315_v27, %v1058_v26  ;;  %v1060_v33 = vpop.f32.mrf.mxu0 }
 0x19a   : > { %v1317_v34 = vpop.f32.mrf.mxu1 }
 0x19b   : > { %2365 = vst [vmem:[%s3621_s19 + $0x2a0] sm:$0xff] %v1316_v32  ;;  %v1318_v35 = vadd.f32 %v1317_v34, %v1060_v33  ;;  %v1064_v40 = vpop.f32.mrf.mxu0 }
 0x19c   : > { %v1321_v41 = vpop.f32.mrf.mxu1 }
 0x19d   : > { %2366 = vst [vmem:[%s3621_s19 + $0x2a8] sm:$0xff] %v1318_v35  ;;  %v1322_v42 = vadd.f32 %v1321_v41, %v1064_v40  ;;  %v1066_v43 = vpop.f32.mrf.mxu0 }
 0x19e   : > { %v1323_v48 = vpop.f32.mrf.mxu1 }
 0x19f   : > { %2369 = vst [vmem:[%s3621_s19 + $0x2c0] sm:$0xff] %v1322_v42  ;;  %v1324_v49 = vadd.f32 %v1323_v48, %v1066_v43  ;;  %v1070_v50 = vpop.f32.mrf.mxu0 }
 0x1a0   : > { %v1327_v51 = vpop.f32.mrf.mxu1 }
 0x1a1   : > { %2370 = vst [vmem:[%s3621_s19 + $0x2c8] sm:$0xff] %v1324_v49  ;;  %v1328_v56 = vadd.f32 %v1327_v51, %v1070_v50  ;;  %v1072_v57 = vpop.f32.mrf.mxu0 }
 0x1a2   : > { %v1329_v58 = vpop.f32.mrf.mxu1 }
 0x1a3   : > { %2373 = vst [vmem:[%s3621_s19 + $0x2e0] sm:$0xff] %v1328_v56  ;;  %v1330_v59 = vadd.f32 %v1329_v58, %v1072_v57  ;;  %v1076_v0 = vpop.f32.mrf.mxu0 }
 0x1a4   : > { %v1333_v1 = vpop.f32.mrf.mxu1 }
 0x1a5   : > { %2374 = vst [vmem:[%s3621_s19 + $0x2e8] sm:$0xff] %v1330_v59  ;;  %v1334_v2 = vadd.f32 %v1333_v1, %v1076_v0  ;;  %v1078_v3 = vpop.f32.mrf.mxu0 }
 0x1a6   : > { %v1335_v12 = vpop.f32.mrf.mxu1 }
 0x1a7   : > { %2377 = vst [vmem:[%s3621_s19 + $0x300] sm:$0xff] %v1334_v2  ;;  %v1336_v13 = vadd.f32 %v1335_v12, %v1078_v3  ;;  %v1082_v14 = vpop.f32.mrf.mxu0 }
 0x1a8   : > { %v1339_v15 = vpop.f32.mrf.mxu1 }
 0x1a9   : > { %2378 = vst [vmem:[%s3621_s19 + $0x308] sm:$0xff] %v1336_v13  ;;  %v1340_v28 = vadd.f32 %v1339_v15, %v1082_v14  ;;  %v1084_v29 = vpop.f32.mrf.mxu0 }
 0x1aa   : > { %v1341_v30 = vpop.f32.mrf.mxu1 }
 0x1ab   : > { %2381 = vst [vmem:[%s3621_s19 + $0x320] sm:$0xff] %v1340_v28  ;;  %v1342_v31 = vadd.f32 %v1341_v30, %v1084_v29  ;;  %v1088_v44 = vpop.f32.mrf.mxu0 }
 0x1ac   : > { %v1345_v45 = vpop.f32.mrf.mxu1 }
 0x1ad   : > { %2382 = vst [vmem:[%s3621_s19 + $0x328] sm:$0xff] %v1342_v31  ;;  %v1346_v46 = vadd.f32 %v1345_v45, %v1088_v44  ;;  %v1090_v4 = vpop.f32.mrf.mxu0 }
 0x1ae   : > { %v1347_v5 = vpop.f32.mrf.mxu1 }
 0x1af   : > { %2385 = vst [vmem:[%s3621_s19 + $0x340] sm:$0xff] %v1346_v46  ;;  %v1348_v47 = vadd.f32 %v1347_v5, %v1090_v4  ;;  %v1094_v60 = vpop.f32.mrf.mxu0 }
 0x1b0   : > { %v1351_v61 = vpop.f32.mrf.mxu1 }
 0x1b1   : > { %2386 = vst [vmem:[%s3621_s19 + $0x348] sm:$0xff] %v1348_v47  ;;  %v1352_v62 = vadd.f32 %v1351_v61, %v1094_v60  ;;  %v1096_v6 = vpop.f32.mrf.mxu0 }
 0x1b2   : > { %v1353_v63 = vpop.f32.mrf.mxu1 }
 0x1b3   : > { %2389 = vst [vmem:[%s3621_s19 + $0x360] sm:$0xff] %v1352_v62  ;;  %v1354_v7 = vadd.f32 %v1353_v63, %v1096_v6  ;;  %v1100_v20 = vpop.f32.mrf.mxu0 }
 0x1b4   : > { %v1357_v21 = vpop.f32.mrf.mxu1 }
 0x1b5   : > { %2390 = vst [vmem:[%s3621_s19 + $0x368] sm:$0xff] %v1354_v7  ;;  %v1358_v22 = vadd.f32 %v1357_v21, %v1100_v20  ;;  %v1102_v23 = vpop.f32.mrf.mxu0 }
 0x1b6   : > { %v1359_v36 = vpop.f32.mrf.mxu1 }
 0x1b7   : > { %2393 = vst [vmem:[%s3621_s19 + $0x380] sm:$0xff] %v1358_v22  ;;  %v1360_v37 = vadd.f32 %v1359_v36, %v1102_v23  ;;  %v1106_v38 = vpop.f32.mrf.mxu0 }
 0x1b8   : > { %v1363_v39 = vpop.f32.mrf.mxu1 }
 0x1b9   : > { %2394 = vst [vmem:[%s3621_s19 + $0x388] sm:$0xff] %v1360_v37  ;;  %v1364_v52 = vadd.f32 %v1363_v39, %v1106_v38  ;;  %v1108_v53 = vpop.f32.mrf.mxu0 }
 0x1ba   : > { %v1365_v54 = vpop.f32.mrf.mxu1 }
 0x1bb   : > { %2397 = vst [vmem:[%s3621_s19 + $0x3a0] sm:$0xff] %v1364_v52  ;;  %v1366_v55 = vadd.f32 %v1365_v54, %v1108_v53  ;;  %v1112_v8 = vpop.f32.mrf.mxu0 }
 0x1bc   : > { %v1369_v9 = vpop.f32.mrf.mxu1 }
 0x1bd   : > { %2398 = vst [vmem:[%s3621_s19 + $0x3a8] sm:$0xff] %v1366_v55  ;;  %v1370_v10 = vadd.f32 %v1369_v9, %v1112_v8  ;;  %v1114_v11 = vpop.f32.mrf.mxu0 }
 0x1be   : > { %v1371_v16 = vpop.f32.mrf.mxu1 }
 0x1bf   : > { %2401 = vst [vmem:[%s3621_s19 + $0x3c0] sm:$0xff] %v1370_v10  ;;  %v1372_v17 = vadd.f32 %v1371_v16, %v1114_v11  ;;  %v1118_v18 = vpop.f32.mrf.mxu0 }
 0x1c0   : > { %v1375_v19 = vpop.f32.mrf.mxu1 }
 0x1c1   : > { %2402 = vst [vmem:[%s3621_s19 + $0x3c8] sm:$0xff] %v1372_v17  ;;  %v1376_v24 = vadd.f32 %v1375_v19, %v1118_v18  ;;  %v1120_v25 = vpop.f32.mrf.mxu0 }
 0x1c2   : > { %v1377_v26 = vpop.f32.mrf.mxu1 }
 0x1c3   : > { %2405 = vst [vmem:[%s3621_s19 + $0x3e0] sm:$0xff] %v1376_v24  ;;  %v1378_v27 = vadd.f32 %v1377_v26, %v1120_v25  ;;  %v1446_v32 = vpop.f32.mrf.mxu0 }
 0x1c4   : > { %v1703_v33 = vpop.f32.mrf.mxu1 }
 0x1c5   : > { %2406 = vst [vmem:[%s3621_s19 + $0x3e8] sm:$0xff] %v1378_v27  ;;  %v1704_v34 = vadd.f32 %v1703_v33, %v1446_v32  ;;  %v1448_v35 = vpop.f32.mrf.mxu0 }
 0x1c6   : > { %v1705_v40 = vpop.f32.mrf.mxu1 }
 0x1c7   : > { %2283 = vst [vmem:[%s3621_s19 + $0x10] sm:$0xff] %v1704_v34  ;;  %v1706_v41 = vadd.f32 %v1705_v40, %v1448_v35  ;;  %v1452_v42 = vpop.f32.mrf.mxu0 }
 0x1c8   : > { %v1709_v43 = vpop.f32.mrf.mxu1 }
 0x1c9   : > { %2284 = vst [vmem:[%s3621_s19 + $0x18] sm:$0xff] %v1706_v41  ;;  %v1710_v48 = vadd.f32 %v1709_v43, %v1452_v42  ;;  %v1454_v49 = vpop.f32.mrf.mxu0 }
 0x1ca   : > { %v1711_v50 = vpop.f32.mrf.mxu1 }
 0x1cb   : > { %2287 = vst [vmem:[%s3621_s19 + $0x30] sm:$0xff] %v1710_v48  ;;  %v1712_v51 = vadd.f32 %v1711_v50, %v1454_v49  ;;  %v1458_v56 = vpop.f32.mrf.mxu0 }
 0x1cc   : > { %v1715_v57 = vpop.f32.mrf.mxu1 }
 0x1cd   : > { %2288 = vst [vmem:[%s3621_s19 + $0x38] sm:$0xff] %v1712_v51  ;;  %v1716_v58 = vadd.f32 %v1715_v57, %v1458_v56  ;;  %v1460_v59 = vpop.f32.mrf.mxu0 }
 0x1ce   : > { %v1717_v0 = vpop.f32.mrf.mxu1 }
 0x1cf   : > { %2291 = vst [vmem:[%s3621_s19 + $0x50] sm:$0xff] %v1716_v58  ;;  %v1718_v1 = vadd.f32 %v1717_v0, %v1460_v59  ;;  %v1464_v2 = vpop.f32.mrf.mxu0 }
 0x1d0   : > { %v1721_v3 = vpop.f32.mrf.mxu1 }
 0x1d1   : > { %2292 = vst [vmem:[%s3621_s19 + $0x58] sm:$0xff] %v1718_v1  ;;  %v1722_v12 = vadd.f32 %v1721_v3, %v1464_v2  ;;  %v1466_v13 = vpop.f32.mrf.mxu0 }
 0x1d2   : > { %v1723_v14 = vpop.f32.mrf.mxu1 }
 0x1d3   : > { %2295 = vst [vmem:[%s3621_s19 + $0x70] sm:$0xff] %v1722_v12  ;;  %v1724_v15 = vadd.f32 %v1723_v14, %v1466_v13  ;;  %v1470_v28 = vpop.f32.mrf.mxu0 }
 0x1d4   : > { %v1727_v29 = vpop.f32.mrf.mxu1 }
 0x1d5   : > { %2296 = vst [vmem:[%s3621_s19 + $0x78] sm:$0xff] %v1724_v15  ;;  %v1728_v30 = vadd.f32 %v1727_v29, %v1470_v28  ;;  %v1472_v31 = vpop.f32.mrf.mxu0 }
 0x1d6   : > { %v1729_v44 = vpop.f32.mrf.mxu1 }
 0x1d7   : > { %2299 = vst [vmem:[%s3621_s19 + $0x90] sm:$0xff] %v1728_v30  ;;  %v1730_v45 = vadd.f32 %v1729_v44, %v1472_v31  ;;  %v1476_v46 = vpop.f32.mrf.mxu0 }
 0x1d8   : > { %v1733_v4 = vpop.f32.mrf.mxu1 }
 0x1d9   : > { %2300 = vst [vmem:[%s3621_s19 + $0x98] sm:$0xff] %v1730_v45  ;;  %v1734_v5 = vadd.f32 %v1733_v4, %v1476_v46  ;;  %v1478_v47 = vpop.f32.mrf.mxu0 }
 0x1da   : > { %v1735_v60 = vpop.f32.mrf.mxu1 }
 0x1db   : > { %2303 = vst [vmem:[%s3621_s19 + $0xb0] sm:$0xff] %v1734_v5  ;;  %v1736_v61 = vadd.f32 %v1735_v60, %v1478_v47  ;;  %v1482_v62 = vpop.f32.mrf.mxu0 }
 0x1dc   : > { %v1739_v6 = vpop.f32.mrf.mxu1 }
 0x1dd   : > { %2304 = vst [vmem:[%s3621_s19 + $0xb8] sm:$0xff] %v1736_v61  ;;  %v1740_v63 = vadd.f32 %v1739_v6, %v1482_v62  ;;  %v1484_v7 = vpop.f32.mrf.mxu0 }
 0x1de   : > { %v1741_v20 = vpop.f32.mrf.mxu1 }
 0x1df   : > { %2307 = vst [vmem:[%s3621_s19 + $0xd0] sm:$0xff] %v1740_v63  ;;  %v1742_v21 = vadd.f32 %v1741_v20, %v1484_v7  ;;  %v1488_v22 = vpop.f32.mrf.mxu0 }
 0x1e0   : > { %v1745_v23 = vpop.f32.mrf.mxu1 }
 0x1e1   : > { %2308 = vst [vmem:[%s3621_s19 + $0xd8] sm:$0xff] %v1742_v21  ;;  %v1746_v36 = vadd.f32 %v1745_v23, %v1488_v22  ;;  %v1490_v37 = vpop.f32.mrf.mxu0 }
 0x1e2   : > { %v1747_v38 = vpop.f32.mrf.mxu1 }
 0x1e3   : > { %2311 = vst [vmem:[%s3621_s19 + $0xf0] sm:$0xff] %v1746_v36  ;;  %v1748_v39 = vadd.f32 %v1747_v38, %v1490_v37  ;;  %v1494_v52 = vpop.f32.mrf.mxu0 }
 0x1e4   : > { %v1751_v53 = vpop.f32.mrf.mxu1 }
 0x1e5   : > { %2312 = vst [vmem:[%s3621_s19 + $0xf8] sm:$0xff] %v1748_v39  ;;  %v1752_v54 = vadd.f32 %v1751_v53, %v1494_v52  ;;  %v1496_v55 = vpop.f32.mrf.mxu0 }
 0x1e6   : > { %v1753_v8 = vpop.f32.mrf.mxu1 }
 0x1e7   : > { %2315 = vst [vmem:[%s3621_s19 + $0x110] sm:$0xff] %v1752_v54  ;;  %v1754_v9 = vadd.f32 %v1753_v8, %v1496_v55  ;;  %v1500_v10 = vpop.f32.mrf.mxu0 }
 0x1e8   : > { %v1757_v11 = vpop.f32.mrf.mxu1 }
 0x1e9   : > { %2316 = vst [vmem:[%s3621_s19 + $0x118] sm:$0xff] %v1754_v9  ;;  %v1758_v16 = vadd.f32 %v1757_v11, %v1500_v10  ;;  %v1502_v17 = vpop.f32.mrf.mxu0 }
 0x1ea   : > { %v1759_v18 = vpop.f32.mrf.mxu1 }
 0x1eb   : > { %2319 = vst [vmem:[%s3621_s19 + $0x130] sm:$0xff] %v1758_v16  ;;  %v1760_v19 = vadd.f32 %v1759_v18, %v1502_v17  ;;  %v1506_v24 = vpop.f32.mrf.mxu0 }
 0x1ec   : > { %v1763_v25 = vpop.f32.mrf.mxu1 }
 0x1ed   : > { %2320 = vst [vmem:[%s3621_s19 + $0x138] sm:$0xff] %v1760_v19  ;;  %v1764_v26 = vadd.f32 %v1763_v25, %v1506_v24  ;;  %v1508_v27 = vpop.f32.mrf.mxu0 }
 0x1ee   : > { %v1765_v32 = vpop.f32.mrf.mxu1 }
 0x1ef   : > { %2323 = vst [vmem:[%s3621_s19 + $0x150] sm:$0xff] %v1764_v26  ;;  %v1766_v33 = vadd.f32 %v1765_v32, %v1508_v27  ;;  %v1512_v34 = vpop.f32.mrf.mxu0 }
 0x1f0   : > { %v1769_v35 = vpop.f32.mrf.mxu1 }
 0x1f1   : > { %2324 = vst [vmem:[%s3621_s19 + $0x158] sm:$0xff] %v1766_v33  ;;  %v1770_v40 = vadd.f32 %v1769_v35, %v1512_v34  ;;  %v1514_v41 = vpop.f32.mrf.mxu0 }
 0x1f2   : > { %v1771_v42 = vpop.f32.mrf.mxu1 }
 0x1f3   : > { %2327 = vst [vmem:[%s3621_s19 + $0x170] sm:$0xff] %v1770_v40  ;;  %v1772_v43 = vadd.f32 %v1771_v42, %v1514_v41  ;;  %v1518_v48 = vpop.f32.mrf.mxu0 }
 0x1f4   : > { %v1775_v49 = vpop.f32.mrf.mxu1 }
 0x1f5   : > { %2328 = vst [vmem:[%s3621_s19 + $0x178] sm:$0xff] %v1772_v43  ;;  %v1776_v50 = vadd.f32 %v1775_v49, %v1518_v48  ;;  %v1520_v51 = vpop.f32.mrf.mxu0 }
 0x1f6   : > { %v1777_v56 = vpop.f32.mrf.mxu1 }
 0x1f7   : > { %2331 = vst [vmem:[%s3621_s19 + $0x190] sm:$0xff] %v1776_v50  ;;  %v1778_v57 = vadd.f32 %v1777_v56, %v1520_v51  ;;  %v1524_v58 = vpop.f32.mrf.mxu0 }
 0x1f8   : > { %v1781_v59 = vpop.f32.mrf.mxu1 }
 0x1f9   : > { %2332 = vst [vmem:[%s3621_s19 + $0x198] sm:$0xff] %v1778_v57  ;;  %v1782_v0 = vadd.f32 %v1781_v59, %v1524_v58  ;;  %v1526_v1 = vpop.f32.mrf.mxu0 }
 0x1fa   : > { %v1783_v2 = vpop.f32.mrf.mxu1 }
 0x1fb   : > { %2335 = vst [vmem:[%s3621_s19 + $0x1b0] sm:$0xff] %v1782_v0  ;;  %v1784_v3 = vadd.f32 %v1783_v2, %v1526_v1  ;;  %v1530_v12 = vpop.f32.mrf.mxu0 }
 0x1fc   : > { %v1787_v13 = vpop.f32.mrf.mxu1 }
 0x1fd   : > { %2336 = vst [vmem:[%s3621_s19 + $0x1b8] sm:$0xff] %v1784_v3  ;;  %v1788_v14 = vadd.f32 %v1787_v13, %v1530_v12  ;;  %v1532_v15 = vpop.f32.mrf.mxu0 }
 0x1fe   : > { %v1789_v28 = vpop.f32.mrf.mxu1 }
 0x1ff   : > { %2339 = vst [vmem:[%s3621_s19 + $0x1d0] sm:$0xff] %v1788_v14  ;;  %v1790_v29 = vadd.f32 %v1789_v28, %v1532_v15  ;;  %v1536_v30 = vpop.f32.mrf.mxu0 }
 0x200   : > { %v1793_v31 = vpop.f32.mrf.mxu1 }
 0x201   : > { %2340 = vst [vmem:[%s3621_s19 + $0x1d8] sm:$0xff] %v1790_v29  ;;  %v1794_v44 = vadd.f32 %v1793_v31, %v1536_v30  ;;  %v1538_v45 = vpop.f32.mrf.mxu0 }
 0x202   : > { %v1795_v46 = vpop.f32.mrf.mxu1 }
 0x203   : > { %2343 = vst [vmem:[%s3621_s19 + $0x1f0] sm:$0xff] %v1794_v44  ;;  %v1796_v4 = vadd.f32 %v1795_v46, %v1538_v45  ;;  %v1542_v5 = vpop.f32.mrf.mxu0 }
 0x204   : > { %v1799_v47 = vpop.f32.mrf.mxu1 }
 0x205   : > { %2344 = vst [vmem:[%s3621_s19 + $0x1f8] sm:$0xff] %v1796_v4  ;;  %v1800_v60 = vadd.f32 %v1799_v47, %v1542_v5  ;;  %v1544_v61 = vpop.f32.mrf.mxu0 }
 0x206   : > { %v1801_v62 = vpop.f32.mrf.mxu1 }
 0x207   : > { %2347 = vst [vmem:[%s3621_s19 + $0x210] sm:$0xff] %v1800_v60  ;;  %v1802_v6 = vadd.f32 %v1801_v62, %v1544_v61  ;;  %v1548_v63 = vpop.f32.mrf.mxu0 }
 0x208   : > { %v1805_v7 = vpop.f32.mrf.mxu1 }
 0x209   : > { %2348 = vst [vmem:[%s3621_s19 + $0x218] sm:$0xff] %v1802_v6  ;;  %v1806_v20 = vadd.f32 %v1805_v7, %v1548_v63  ;;  %v1550_v21 = vpop.f32.mrf.mxu0 }
 0x20a   : > { %v1807_v22 = vpop.f32.mrf.mxu1 }
 0x20b   : > { %2351 = vst [vmem:[%s3621_s19 + $0x230] sm:$0xff] %v1806_v20  ;;  %v1808_v23 = vadd.f32 %v1807_v22, %v1550_v21  ;;  %v1554_v36 = vpop.f32.mrf.mxu0 }
 0x20c   : > { %v1811_v37 = vpop.f32.mrf.mxu1 }
 0x20d   : > { %2352 = vst [vmem:[%s3621_s19 + $0x238] sm:$0xff] %v1808_v23  ;;  %v1812_v38 = vadd.f32 %v1811_v37, %v1554_v36  ;;  %v1556_v39 = vpop.f32.mrf.mxu0 }
 0x20e   : > { %v1813_v52 = vpop.f32.mrf.mxu1 }
 0x20f   : > { %2355 = vst [vmem:[%s3621_s19 + $0x250] sm:$0xff] %v1812_v38  ;;  %v1814_v53 = vadd.f32 %v1813_v52, %v1556_v39  ;;  %v1560_v54 = vpop.f32.mrf.mxu0 }
 0x210   : > { %v1817_v55 = vpop.f32.mrf.mxu1 }
 0x211   : > { %2356 = vst [vmem:[%s3621_s19 + $0x258] sm:$0xff] %v1814_v53  ;;  %v1818_v8 = vadd.f32 %v1817_v55, %v1560_v54  ;;  %v1562_v9 = vpop.f32.mrf.mxu0 }
 0x212   : > { %v1819_v10 = vpop.f32.mrf.mxu1 }
 0x213   : > { %2359 = vst [vmem:[%s3621_s19 + $0x270] sm:$0xff] %v1818_v8  ;;  %v1820_v11 = vadd.f32 %v1819_v10, %v1562_v9  ;;  %v1566_v16 = vpop.f32.mrf.mxu0 }
 0x214   : > { %v1823_v17 = vpop.f32.mrf.mxu1 }
 0x215   : > { %2360 = vst [vmem:[%s3621_s19 + $0x278] sm:$0xff] %v1820_v11  ;;  %v1824_v18 = vadd.f32 %v1823_v17, %v1566_v16  ;;  %v1568_v19 = vpop.f32.mrf.mxu0 }
 0x216   : > { %v1825_v24 = vpop.f32.mrf.mxu1 }
 0x217   : > { %2363 = vst [vmem:[%s3621_s19 + $0x290] sm:$0xff] %v1824_v18  ;;  %v1826_v25 = vadd.f32 %v1825_v24, %v1568_v19  ;;  %v1572_v26 = vpop.f32.mrf.mxu0 }
 0x218   : > { %v1829_v27 = vpop.f32.mrf.mxu1 }
 0x219   : > { %2364 = vst [vmem:[%s3621_s19 + $0x298] sm:$0xff] %v1826_v25  ;;  %v1830_v32 = vadd.f32 %v1829_v27, %v1572_v26  ;;  %v1574_v33 = vpop.f32.mrf.mxu0 }
 0x21a   : > { %v1831_v34 = vpop.f32.mrf.mxu1 }
 0x21b   : > { %2367 = vst [vmem:[%s3621_s19 + $0x2b0] sm:$0xff] %v1830_v32  ;;  %v1832_v35 = vadd.f32 %v1831_v34, %v1574_v33  ;;  %v1578_v40 = vpop.f32.mrf.mxu0 }
 0x21c   : > { %v1835_v41 = vpop.f32.mrf.mxu1 }
 0x21d   : > { %2368 = vst [vmem:[%s3621_s19 + $0x2b8] sm:$0xff] %v1832_v35  ;;  %v1836_v42 = vadd.f32 %v1835_v41, %v1578_v40  ;;  %v1580_v43 = vpop.f32.mrf.mxu0 }
 0x21e   : > { %v1837_v48 = vpop.f32.mrf.mxu1 }
 0x21f   : > { %2371 = vst [vmem:[%s3621_s19 + $0x2d0] sm:$0xff] %v1836_v42  ;;  %v1838_v49 = vadd.f32 %v1837_v48, %v1580_v43  ;;  %v1584_v50 = vpop.f32.mrf.mxu0 }
 0x220   : > { %v1841_v51 = vpop.f32.mrf.mxu1 }
 0x221   : > { %2372 = vst [vmem:[%s3621_s19 + $0x2d8] sm:$0xff] %v1838_v49  ;;  %v1842_v56 = vadd.f32 %v1841_v51, %v1584_v50  ;;  %v1586_v57 = vpop.f32.mrf.mxu0 }
 0x222   : > { %v1843_v58 = vpop.f32.mrf.mxu1 }
 0x223   : > { %2375 = vst [vmem:[%s3621_s19 + $0x2f0] sm:$0xff] %v1842_v56  ;;  %v1844_v59 = vadd.f32 %v1843_v58, %v1586_v57  ;;  %v1590_v0 = vpop.f32.mrf.mxu0 }
 0x224   : > { %v1847_v1 = vpop.f32.mrf.mxu1 }
 0x225   : > { %2376 = vst [vmem:[%s3621_s19 + $0x2f8] sm:$0xff] %v1844_v59  ;;  %v1848_v2 = vadd.f32 %v1847_v1, %v1590_v0  ;;  %v1592_v3 = vpop.f32.mrf.mxu0 }
 0x226   : > { %v1849_v12 = vpop.f32.mrf.mxu1 }
 0x227   : > { %2379 = vst [vmem:[%s3621_s19 + $0x310] sm:$0xff] %v1848_v2  ;;  %v1850_v13 = vadd.f32 %v1849_v12, %v1592_v3  ;;  %v1596_v14 = vpop.f32.mrf.mxu0 }
 0x228   : > { %v1853_v15 = vpop.f32.mrf.mxu1 }
 0x229   : > { %2380 = vst [vmem:[%s3621_s19 + $0x318] sm:$0xff] %v1850_v13  ;;  %v1854_v28 = vadd.f32 %v1853_v15, %v1596_v14  ;;  %v1598_v29 = vpop.f32.mrf.mxu0 }
 0x22a   : > { %v1855_v30 = vpop.f32.mrf.mxu1 }
 0x22b   : > { %2383 = vst [vmem:[%s3621_s19 + $0x330] sm:$0xff] %v1854_v28  ;;  %v1856_v31 = vadd.f32 %v1855_v30, %v1598_v29  ;;  %v1602_v44 = vpop.f32.mrf.mxu0 }
 0x22c   : > { %v1859_v45 = vpop.f32.mrf.mxu1 }
 0x22d   : > { %2384 = vst [vmem:[%s3621_s19 + $0x338] sm:$0xff] %v1856_v31  ;;  %v1860_v46 = vadd.f32 %v1859_v45, %v1602_v44  ;;  %v1604_v4 = vpop.f32.mrf.mxu0 }
 0x22e   : > { %v1861_v5 = vpop.f32.mrf.mxu1 }
 0x22f   : > { %2387 = vst [vmem:[%s3621_s19 + $0x350] sm:$0xff] %v1860_v46  ;;  %v1862_v47 = vadd.f32 %v1861_v5, %v1604_v4  ;;  %v1608_v60 = vpop.f32.mrf.mxu0 }
 0x230   : > { %v1865_v61 = vpop.f32.mrf.mxu1 }
 0x231   : > { %2388 = vst [vmem:[%s3621_s19 + $0x358] sm:$0xff] %v1862_v47  ;;  %v1866_v62 = vadd.f32 %v1865_v61, %v1608_v60  ;;  %v1610_v6 = vpop.f32.mrf.mxu0 }
 0x232   : > { %v1867_v63 = vpop.f32.mrf.mxu1 }
 0x233   : > { %2391 = vst [vmem:[%s3621_s19 + $0x370] sm:$0xff] %v1866_v62  ;;  %v1868_v7 = vadd.f32 %v1867_v63, %v1610_v6  ;;  %v1614_v20 = vpop.f32.mrf.mxu0 }
 0x234   : > { %v1871_v21 = vpop.f32.mrf.mxu1 }
 0x235   : > { %2392 = vst [vmem:[%s3621_s19 + $0x378] sm:$0xff] %v1868_v7  ;;  %v1872_v22 = vadd.f32 %v1871_v21, %v1614_v20  ;;  %v1616_v23 = vpop.f32.mrf.mxu0 }
 0x236   : > { %v1873_v36 = vpop.f32.mrf.mxu1 }
 0x237   : > { %2395 = vst [vmem:[%s3621_s19 + $0x390] sm:$0xff] %v1872_v22  ;;  %v1874_v37 = vadd.f32 %v1873_v36, %v1616_v23  ;;  %v1620_v38 = vpop.f32.mrf.mxu0 }
 0x238   : > { %v1877_v39 = vpop.f32.mrf.mxu1 }
 0x239   : > { %2396 = vst [vmem:[%s3621_s19 + $0x398] sm:$0xff] %v1874_v37  ;;  %v1878_v52 = vadd.f32 %v1877_v39, %v1620_v38  ;;  %v1622_v53 = vpop.f32.mrf.mxu0 }
 0x23a   : > { %v1879_v54 = vpop.f32.mrf.mxu1 }
 0x23b   : > { %2399 = vst [vmem:[%s3621_s19 + $0x3b0] sm:$0xff] %v1878_v52  ;;  %v1880_v55 = vadd.f32 %v1879_v54, %v1622_v53  ;;  %v1626_v8 = vpop.f32.mrf.mxu0 }
 0x23c   : > { %v1883_v9 = vpop.f32.mrf.mxu1 }
 0x23d   : > { %2400 = vst [vmem:[%s3621_s19 + $0x3b8] sm:$0xff] %v1880_v55  ;;  %v1884_v10 = vadd.f32 %v1883_v9, %v1626_v8  ;;  %v1628_v11 = vpop.f32.mrf.mxu0 }
 0x23e   : > { %v1885_v16 = vpop.f32.mrf.mxu1 }
 0x23f   : > { %2403 = vst [vmem:[%s3621_s19 + $0x3d0] sm:$0xff] %v1884_v10  ;;  %v1886_v17 = vadd.f32 %v1885_v16, %v1628_v11  ;;  %v1632_v18 = vpop.f32.mrf.mxu0 }
 0x240   : > { %v1889_v19 = vpop.f32.mrf.mxu1 }
 0x241   : > { %2404 = vst [vmem:[%s3621_s19 + $0x3d8] sm:$0xff] %v1886_v17  ;;  %v1890_v24 = vadd.f32 %v1889_v19, %v1632_v18  ;;  %v1634_v25 = vpop.f32.mrf.mxu0 }
 0x242   : > { %v1891_v26 = vpop.f32.mrf.mxu1 }
 0x243   : > { %2407 = vst [vmem:[%s3621_s19 + $0x3f0] sm:$0xff] %v1890_v24  ;;  %v1892_v27 = vadd.f32 %v1891_v26, %v1634_v25 }
 0x245   : > { %2408 = vst [vmem:[%s3621_s19 + $0x3f8] sm:$0xff] %v1892_v27 }
 0x246   : > { %2702 = shalt.err (!%p2699_p0)
}
 0x247   : > { %s2703_s4 = scalar_lea.hbm %s3812_s23, 16384  ;;  %s2707_s5 = scalar_lea.hbm %s3865_s2, 49152 }
 0x248   : > { %p2704_p1 = scmp.ne.s32.totalorder %s3812_s23, %s2703_s4  ;;  %p2708_p9 = scmp.lt.s32.totalorder %s3812_s23, %s3865_s2 }
 0x249   : > { %p2709_p11 = scmp.lt.s32.totalorder %s2707_s5, %s2703_s4 }
 0x24a   : > { %p2705_p5 = pnand %p2704_p1, %p4085_p12 }
 0x24b   : > { %p2710_p2 = por %p2709_p11, %p2708_p9 }
 0x24c   : > { %p2706_p7 = pneg %p2705_p5 }
 0x24e   : > { %p2711_p3 = pnand %p2710_p2, %p2706_p7 }
 0x250   : > { %2714 = shalt.err (!%p2711_p3)
}
 0x251   : > { %s2781_s15 = smov 512   ;;  %s2782_s17 = smov 1536  }
 0x252   : > { %s2783_s19 = smov 32  }
 0x253   : > { %2558 = dma.vmem_to_hbm [thread:$0]  (%p4085_p12), %s3814_s30, 16384, %s3812_s23, %s2410_s12, %s2781_s15, %s2782_s17, %s2783_s19  }
 0x254 PF: > { %s4086_s22 = sld [smem:[#allocation12_spill]]  ;;  %p2575_p13 = scmp.ge.s32.totalorder %s2773_s14, 2 }
 0x255   : > { %s2441_s16 = sand.u32 1, %s2753_s9  }
 0x256   : > { %s2442_s18 = scalar_lea.sflag [#allocation5], %s2441_s16 }
 0x25a   : > { %p4087_p4 = scmp.ne.s32.totalorder %s4086_s22, 0 }
 0x25c   : > { %p2569_p6 = pnand %p2575_p13, %p4087_p4 }
 0x25e   : > { %p2570_p8 = pneg %p2569_p6 }
 0x260   : > { %2748 = dma.done.wait (%p2570_p8), %s2442_s18, 16384  }
 0x261   : > { %2750 = vsyncadd (%p2570_p8), %s2442_s18, 4294950912  ;;  %s19_s14 = sadd.s32 1, %s2773_s14   ;;  %s4088_s9 = smov %s2757_s10 }
 0x262   : > { %p16_p10 = scmp.ge.s32.totalorder %s19_s14, 5   ;;  %s4089_s10 = smov %s2761_s11 }
 0x263   : > { %s4090_s11 = smov %s2901_s21  ;;  %s4091_s12 = smov %s2769_s13 }
 0x264   : > { %s4092_s13 = smov %s4094_s27  ;;  %18 = sbr.rel (!%p16_p10) target bundleno = 7 (0x7), region = 87 }
 0x269   :  { %2447 = vsyncpa [#allocation4], 1 }
 0x26a   :  { %2449 = vsyncpa [#allocation4 + $0x1], 1 }
 0x26b   :  { %2450 = vsyncpa [#allocation7], 1 }
 0x26c   :  { %2452 = vsyncpa [#allocation7 + $0x1], 1 }
 0x26d   :  { %2453 = vsyncpa [#allocation5], 1 }
 0x26e   :  { %2455 = vsyncpa [#allocation5 + $0x1], 1 }

</bundles_post_ra>
